<compile_context>
chip_gen: v7x
topology: tpu7x:2x2x1
jax: 0.10.0
libtpu: 0.0.40
codegen_flags: <defaults>
</compile_context>

<pallas_src>
from collections import deque
from functools import partial

import numpy as np
import jax
import jax.numpy as jnp
from jax import lax
from jax.experimental import pallas as pl
from jax.experimental.pallas import tpu as pltpu


def _round_up(x, m):
    return ((x + m - 1) // m) * m


def _default_compute_dtype():
    """bf16 inner-loop compute only on generations with bf16 VPU/EUP."""
    try:
        kind = jax.devices()[0].device_kind.lower()
    except Exception:
        return jnp.float32
    if any(tag in kind for tag in ("v2", "v3", "v4", "v5")):
        return jnp.float32          # no bf16 VALU/EUP on these
    return jnp.bfloat16             # v6e / v7x / newer


# ----------------------------- Pallas kernel -------------------------------

def _pair_score_kernel(a_ref, bT_ref, w2_ref, b2_ref, out_ref, *,
                       strip_rows, compute_dtype):
    """One (TM, TN) tile of S[i, j] = sigmoid(w2 . ELU(a_i + b_j) + b2).

    a_ref : (TM, H)  VMEM  i-tile of  x @ W1a^T
    bT_ref: (H, TN)  VMEM  j-tile of (x @ W1b^T + b1)^T
    w2_ref: (H,)     SMEM  second-layer weights
    b2_ref: (1,)     SMEM  second-layer bias

    The tile is processed in (strip_rows, TN) row strips so the accumulator
    and all per-h temporaries stay vreg-resident (no full-tile VMEM
    round-trips), and the fori_loop bounds their live ranges.
    """
    tm, h_dim = a_ref.shape
    tn = out_ref.shape[1]
    n_strips = tm // strip_rows

    # Small (H, TN) operand, loaded and cast to the compute dtype once.
    bT = bT_ref[...].astype(compute_dtype)          # (H, TN)
    b2 = b2_ref[0]                                   # f32 scalar from SMEM

    def strip_body(si, carry):
        r0 = pl.multiple_of(si * strip_rows, strip_rows)
        a_strip = a_ref[pl.ds(r0, strip_rows), :].astype(compute_dtype)  # (R, H)
        acc = jnp.zeros((strip_rows, tn), jnp.float32)
        # Static unroll over the small hidden dim: each temporary is only a
        # few vregs (strip-sized) and is consumed immediately into acc.
        for h in range(h_dim):
            pre = a_strip[:, h:h + 1] + bT[h:h + 1, :]            # (R, TN)
            # ELU(alpha=1).  (plain exp kept instead of expm1 for guaranteed
            # Mosaic lowering; the extra subtract hides under the EUP exp.)
            hid = jnp.where(pre > 0, pre, jnp.exp(pre) - 1.0)
            acc = acc + w2_ref[h] * hid.astype(jnp.float32)
        logits = acc + b2
        e = jnp.exp(-logits)                                       # EUP
        s_out = pl.reciprocal(1.0 + e, approx=True)                # EUP vrcp
        out_ref[pl.ds(r0, strip_rows), :] = s_out.astype(out_ref.dtype)
        return carry

    lax.fori_loop(0, n_strips, strip_body, 0)


@partial(jax.jit, static_argnames=("out_dtype", "compute_dtype"))
def pairwise_scores(node_embeddings, w1, b1, w2, b2,
                    out_dtype=jnp.bfloat16, compute_dtype=jnp.float32):
    """Dense (N, N) sigmoid connection scores via a tiled Pallas call."""
    x = jnp.asarray(node_embeddings, jnp.float32)
    n, h = x.shape
    w1 = jnp.asarray(w1, jnp.float32)
    b1 = jnp.asarray(b1, jnp.float32)

    # Hoisted projections: W1 @ cat(e_i, e_j) = W1a @ e_i + W1b @ e_j.
    a = x @ w1[:, :h].T                 # (N, H) — "current" half
    b = x @ w1[:, h:].T + b1            # (N, H) — "neighbor" half, b1 folded

    # Fixed large tiles: pad N to a multiple of 512; TM=512 rows, TN=256
    # lanes (>=2 j-tiles even for N<=512, so both v7x cores get work).
    TM, TN, R = 512, 256, 16
    n_pad = _round_up(max(n, 1), TM)
    pad = n_pad - n
    a_p = jnp.pad(a, ((0, pad), (0, 0)))        # (n_pad, H)
    bT_p = jnp.pad(b, ((0, pad), (0, 0))).T     # (H, n_pad)

    w2_vec = jnp.asarray(w2, jnp.float32).reshape(h)
    b2_vec = jnp.asarray(b2, jnp.float32).reshape(1)

    out_itemsize = jnp.dtype(out_dtype).itemsize
    grid = (n_pad // TM, n_pad // TN)
    kernel = partial(_pair_score_kernel, strip_rows=R, compute_dtype=compute_dtype)

    scores_pad = pl.pallas_call(
        kernel,
        out_shape=jax.ShapeDtypeStruct((n_pad, n_pad), out_dtype),
        grid=grid,
        in_specs=[
            pl.BlockSpec((TM, h), lambda i, j: (i, 0)),             # i-tile of a
            pl.BlockSpec((h, TN), lambda i, j: (0, j)),             # j-tile of b^T
            pl.BlockSpec(memory_space=pltpu.MemorySpace.SMEM),      # w2
            pl.BlockSpec(memory_space=pltpu.MemorySpace.SMEM),      # b2
        ],
        out_specs=pl.BlockSpec((TM, TN), lambda i, j: (i, j)),
        compiler_params=pltpu.CompilerParams(
            dimension_semantics=("parallel", "parallel"),
            vmem_limit_bytes=32 * 1024 * 1024,
        ),
        cost_estimate=pl.CostEstimate(
            flops=7 * n_pad * n_pad * h,
            transcendentals=n_pad * n_pad * (h + 2),
            bytes_accessed=out_itemsize * n_pad * n_pad + 8 * n_pad * h + 4 * (h + 1),
        ),
    )(a_p, bT_p, w2_vec, b2_vec)

    return scores_pad[:n, :n]


# ------------------------ host-side path building --------------------------
# TODO(synk): the greedy BFS path construction is inherently sequential,
# data-dependent Python control flow returning Python lists (as in the
# PyTorch module); it is executed on the host from the precomputed scores.

def _build_path_from_root(root_idx, score_matrix):
    """Greedy BFS path construction; vectorized but identical in behavior to
    the PyTorch module (pick unvisited max if > 0.3, lowest index on ties)."""
    n_nodes = score_matrix.shape[0]
    if n_nodes == 0:
        return []
    visited = np.zeros(n_nodes, dtype=bool)
    visited[root_idx] = True
    path = [root_idx]
    path_scores = [1.0]
    queue = deque([root_idx])
    neg_inf = np.float32(-np.inf)
    while queue:
        current = queue.popleft()
        masked = np.where(visited, neg_inf, score_matrix[current])
        best = int(np.argmax(masked))
        best_score = float(masked[best])
        if best_score > 0.3:
            path.append(best)
            path_scores.append(best_score)
            queue.append(best)
            visited[best] = True
    return path


def enhanced_path_reconstructor_forward(node_embeddings, batch, params,
                                        compute_dtype=None):
    if compute_dtype is None:
        compute_dtype = _default_compute_dtype()
    w1, b1, w2, b2 = params
    scores = jax.block_until_ready(
        pairwise_scores(node_embeddings, w1, b1, w2, b2,
                        compute_dtype=compute_dtype))
    scores_np = np.asarray(scores).astype(np.float32)
    emb_np = np.asarray(node_embeddings)
    batch_np = np.asarray(batch)

    paths = []
    for batch_idx in np.unique(batch_np):
        idx = np.nonzero(batch_np == batch_idx)[0]
        if idx.size > 0:
            batch_scores = scores_np[np.ix_(idx, idx)]
            # Local (within-graph) indices, exactly like the PyTorch module.
            root_idx = int(np.argmax(emb_np[idx][:, 0]))
            paths.append(_build_path_from_root(root_idx, batch_scores))
    return paths, scores


# --------------------------------- main -------------------------------------

if __name__ == "__main__":
    hidden_dim = 32
    nodes_per_graph = 8
    num_graphs = 2
    n_total = num_graphs * nodes_per_graph

    key = jax.random.PRNGKey(0)
    k_x, k_w1, k_b1, k_w2, k_b2 = jax.random.split(key, 5)

    # Deterministic parameter init mimicking nn.Linear.reset_parameters():
    # uniform(-1/sqrt(fan_in), 1/sqrt(fan_in)) for both weight and bias.
    bound1 = 1.0 / np.sqrt(2 * hidden_dim)
    w1 = jax.random.uniform(k_w1, (hidden_dim, 2 * hidden_dim),
                            minval=-bound1, maxval=bound1, dtype=jnp.float32)
    b1 = jax.random.uniform(k_b1, (hidden_dim,),
                            minval=-bound1, maxval=bound1, dtype=jnp.float32)
    bound2 = 1.0 / np.sqrt(hidden_dim)
    w2 = jax.random.uniform(k_w2, (1, hidden_dim),
                            minval=-bound2, maxval=bound2, dtype=jnp.float32)
    b2 = jax.random.uniform(k_b2, (1,),
                            minval=-bound2, maxval=bound2, dtype=jnp.float32)
    params = (w1, b1, w2, b2)

    node_embeddings = jax.random.normal(k_x, (n_total, hidden_dim), dtype=jnp.float32)
    batch = jnp.repeat(jnp.arange(num_graphs, dtype=jnp.int32), nodes_per_graph)

    compute_dtype = _default_compute_dtype()
    paths, scores = enhanced_path_reconstructor_forward(
        node_embeddings, batch, params, compute_dtype=compute_dtype)

    # Pure-JAX reference check of the kernel's pairwise scores.
    def ref_scores(x, w1, b1, w2, b2):
        ei = jnp.repeat(x, x.shape[0], axis=0)                  # (N*N, H) current
        ej = jnp.tile(x, (x.shape[0], 1))                       # (N*N, H) neighbor
        pair = jnp.concatenate([ei, ej], axis=-1)               # (N*N, 2H)
        hmid = jax.nn.elu(pair @ w1.T + b1)
        s = jax.nn.sigmoid(hmid @ w2.T + b2)
        return s.reshape(x.shape[0], x.shape[0])

    ref = np.asarray(ref_scores(node_embeddings, w1, b1, w2, b2))
    got = np.asarray(scores).astype(np.float32)
    # Tolerance relaxed for bf16 inner loop / bf16 writeback / approx-recip
    # sigmoid (scores are only thresholded at 0.3 and rank-ordered downstream).
    atol = 0.06 if compute_dtype == jnp.bfloat16 else 0.01
    assert np.allclose(got, ref, atol=atol), "score mismatch"
    assert len(paths) == num_graphs and all(len(p) >= 1 for p in paths)

    print("KERNEL_OK")
</pallas_src>

<mosaic_0001>
module attributes {stable_mosaic.version = 11 : i64} {
  func.func @_pair_score_kernel(%arg0: i32, %arg1: i32, %arg2: memref<512x32xf32, #tpu.memory_space<vmem>>, %arg3: memref<32x256xf32, #tpu.memory_space<vmem>>, %arg4: memref<32xf32, #tpu.memory_space<smem>>, %arg5: memref<1xf32, #tpu.memory_space<smem>>, %arg6: memref<512x256xbf16, #tpu.memory_space<vmem>>) attributes {dimension_semantics = [#tpu.dimension_semantics<parallel>, #tpu.dimension_semantics<parallel>], iteration_bounds = array<i64: 1, 2>, scalar_prefetch = 0 : i64, scratch_operands = 0 : i64, tpu.core_type = #tpu.core_type<tc>, window_params = [{transform_indices = @transform_0, window_bounds = array<i64: 512, 32>}, {transform_indices = @transform_1, window_bounds = array<i64: 32, 256>}, {transform_indices = @transform_2, window_bounds = array<i64: 32>}, {transform_indices = @transform_3, window_bounds = array<i64: 1>}, {transform_indices = @transform_4, window_bounds = array<i64: 512, 256>}]} {
    %c0 = arith.constant 0 : index
    %c0_0 = arith.constant 0 : index
    %0 = vector.load %arg3[%c0, %c0_0] : memref<32x256xf32, #tpu.memory_space<vmem>>, vector<32x256xf32>
    %1 = arith.truncf %0 : vector<32x256xf32> to vector<32x256xbf16>
    %c0_1 = arith.constant 0 : index
    %2 = memref.load %arg5[%c0_1] : memref<1xf32, #tpu.memory_space<smem>>
    %c0_i32 = arith.constant 0 : i32
    %c32_i32 = arith.constant 32 : i32
    %3 = arith.addi %c0_i32, %c32_i32 : i32
    %c1_i32 = arith.constant 1 : i32
    scf.for %arg7 = %c0_i32 to %3 step %c1_i32  : i32 {
      %c16_i32 = arith.constant 16 : i32
      %4 = arith.muli %arg7, %c16_i32 : i32
      %5 = tpu.assume_multiple %4, 16 : i32
      %6 = arith.index_cast %5 : i32 to index
      %c0_3 = arith.constant 0 : index
      %7 = vector.load %arg2[%6, %c0_3] : memref<512x32xf32, #tpu.memory_space<vmem>>, vector<16x32xf32>
      %8 = arith.truncf %7 : vector<16x32xf32> to vector<16x32xbf16>
      %cst = arith.constant 0.000000e+00 : f32
      %9 = vector.broadcast %cst : f32 to vector<16x256xf32>
      %10 = vector.extract_strided_slice %8 {offsets = [0, 0], sizes = [16, 1], strides = [1, 1]} : vector<16x32xbf16> to vector<16x1xbf16>
      %11 = vector.extract_strided_slice %1 {offsets = [0, 0], sizes = [1, 256], strides = [1, 1]} : vector<32x256xbf16> to vector<1x256xbf16>
      %12 = vector.broadcast %10 : vector<16x1xbf16> to vector<16x256xbf16>
      %13 = vector.broadcast %11 : vector<1x256xbf16> to vector<16x256xbf16>
      %14 = arith.addf %12, %13 : vector<16x256xbf16>
      %cst_4 = arith.constant 0.000000e+00 : bf16
      %15 = vector.broadcast %cst_4 : bf16 to vector<16x256xbf16>
      %16 = arith.cmpf ogt, %14, %15 : vector<16x256xbf16>
      %17 = math.exp %14 : vector<16x256xbf16>
      %cst_5 = arith.constant 1.000000e+00 : bf16
      %18 = vector.broadcast %cst_5 : bf16 to vector<16x256xbf16>
      %19 = arith.subf %17, %18 : vector<16x256xbf16>
      %20 = arith.select %16, %14, %19 : vector<16x256xi1>, vector<16x256xbf16>
      %c0_6 = arith.constant 0 : index
      %21 = memref.load %arg4[%c0_6] : memref<32xf32, #tpu.memory_space<smem>>
      %22 = arith.extf %20 : vector<16x256xbf16> to vector<16x256xf32>
      %23 = vector.broadcast %21 : f32 to vector<16x256xf32>
      %24 = arith.mulf %23, %22 : vector<16x256xf32>
      %25 = arith.addf %9, %24 : vector<16x256xf32>
      %26 = vector.extract_strided_slice %8 {offsets = [0, 1], sizes = [16, 1], strides = [1, 1]} : vector<16x32xbf16> to vector<16x1xbf16>
      %27 = vector.extract_strided_slice %1 {offsets = [1, 0], sizes = [1, 256], strides = [1, 1]} : vector<32x256xbf16> to vector<1x256xbf16>
      %28 = vector.broadcast %26 : vector<16x1xbf16> to vector<16x256xbf16>
      %29 = vector.broadcast %27 : vector<1x256xbf16> to vector<16x256xbf16>
      %30 = arith.addf %28, %29 : vector<16x256xbf16>
      %cst_7 = arith.constant 0.000000e+00 : bf16
      %31 = vector.broadcast %cst_7 : bf16 to vector<16x256xbf16>
      %32 = arith.cmpf ogt, %30, %31 : vector<16x256xbf16>
      %33 = math.exp %30 : vector<16x256xbf16>
      %cst_8 = arith.constant 1.000000e+00 : bf16
      %34 = vector.broadcast %cst_8 : bf16 to vector<16x256xbf16>
      %35 = arith.subf %33, %34 : vector<16x256xbf16>
      %36 = arith.select %32, %30, %35 : vector<16x256xi1>, vector<16x256xbf16>
      %c1 = arith.constant 1 : index
      %37 = memref.load %arg4[%c1] : memref<32xf32, #tpu.memory_space<smem>>
      %38 = arith.extf %36 : vector<16x256xbf16> to vector<16x256xf32>
      %39 = vector.broadcast %37 : f32 to vector<16x256xf32>
      %40 = arith.mulf %39, %38 : vector<16x256xf32>
      %41 = arith.addf %25, %40 : vector<16x256xf32>
      %42 = vector.extract_strided_slice %8 {offsets = [0, 2], sizes = [16, 1], strides = [1, 1]} : vector<16x32xbf16> to vector<16x1xbf16>
      %43 = vector.extract_strided_slice %1 {offsets = [2, 0], sizes = [1, 256], strides = [1, 1]} : vector<32x256xbf16> to vector<1x256xbf16>
      %44 = vector.broadcast %42 : vector<16x1xbf16> to vector<16x256xbf16>
      %45 = vector.broadcast %43 : vector<1x256xbf16> to vector<16x256xbf16>
      %46 = arith.addf %44, %45 : vector<16x256xbf16>
      %cst_9 = arith.constant 0.000000e+00 : bf16
      %47 = vector.broadcast %cst_9 : bf16 to vector<16x256xbf16>
      %48 = arith.cmpf ogt, %46, %47 : vector<16x256xbf16>
      %49 = math.exp %46 : vector<16x256xbf16>
      %cst_10 = arith.constant 1.000000e+00 : bf16
      %50 = vector.broadcast %cst_10 : bf16 to vector<16x256xbf16>
      %51 = arith.subf %49, %50 : vector<16x256xbf16>
      %52 = arith.select %48, %46, %51 : vector<16x256xi1>, vector<16x256xbf16>
      %c2 = arith.constant 2 : index
      %53 = memref.load %arg4[%c2] : memref<32xf32, #tpu.memory_space<smem>>
      %54 = arith.extf %52 : vector<16x256xbf16> to vector<16x256xf32>
      %55 = vector.broadcast %53 : f32 to vector<16x256xf32>
      %56 = arith.mulf %55, %54 : vector<16x256xf32>
      %57 = arith.addf %41, %56 : vector<16x256xf32>
      %58 = vector.extract_strided_slice %8 {offsets = [0, 3], sizes = [16, 1], strides = [1, 1]} : vector<16x32xbf16> to vector<16x1xbf16>
      %59 = vector.extract_strided_slice %1 {offsets = [3, 0], sizes = [1, 256], strides = [1, 1]} : vector<32x256xbf16> to vector<1x256xbf16>
      %60 = vector.broadcast %58 : vector<16x1xbf16> to vector<16x256xbf16>
      %61 = vector.broadcast %59 : vector<1x256xbf16> to vector<16x256xbf16>
      %62 = arith.addf %60, %61 : vector<16x256xbf16>
      %cst_11 = arith.constant 0.000000e+00 : bf16
      %63 = vector.broadcast %cst_11 : bf16 to vector<16x256xbf16>
      %64 = arith.cmpf ogt, %62, %63 : vector<16x256xbf16>
      %65 = math.exp %62 : vector<16x256xbf16>
      %cst_12 = arith.constant 1.000000e+00 : bf16
      %66 = vector.broadcast %cst_12 : bf16 to vector<16x256xbf16>
      %67 = arith.subf %65, %66 : vector<16x256xbf16>
      %68 = arith.select %64, %62, %67 : vector<16x256xi1>, vector<16x256xbf16>
      %c3 = arith.constant 3 : index
      %69 = memref.load %arg4[%c3] : memref<32xf32, #tpu.memory_space<smem>>
      %70 = arith.extf %68 : vector<16x256xbf16> to vector<16x256xf32>
      %71 = vector.broadcast %69 : f32 to vector<16x256xf32>
      %72 = arith.mulf %71, %70 : vector<16x256xf32>
      %73 = arith.addf %57, %72 : vector<16x256xf32>
      %74 = vector.extract_strided_slice %8 {offsets = [0, 4], sizes = [16, 1], strides = [1, 1]} : vector<16x32xbf16> to vector<16x1xbf16>
      %75 = vector.extract_strided_slice %1 {offsets = [4, 0], sizes = [1, 256], strides = [1, 1]} : vector<32x256xbf16> to vector<1x256xbf16>
      %76 = vector.broadcast %74 : vector<16x1xbf16> to vector<16x256xbf16>
      %77 = vector.broadcast %75 : vector<1x256xbf16> to vector<16x256xbf16>
      %78 = arith.addf %76, %77 : vector<16x256xbf16>
      %cst_13 = arith.constant 0.000000e+00 : bf16
      %79 = vector.broadcast %cst_13 : bf16 to vector<16x256xbf16>
      %80 = arith.cmpf ogt, %78, %79 : vector<16x256xbf16>
      %81 = math.exp %78 : vector<16x256xbf16>
      %cst_14 = arith.constant 1.000000e+00 : bf16
      %82 = vector.broadcast %cst_14 : bf16 to vector<16x256xbf16>
      %83 = arith.subf %81, %82 : vector<16x256xbf16>
      %84 = arith.select %80, %78, %83 : vector<16x256xi1>, vector<16x256xbf16>
      %c4 = arith.constant 4 : index
      %85 = memref.load %arg4[%c4] : memref<32xf32, #tpu.memory_space<smem>>
      %86 = arith.extf %84 : vector<16x256xbf16> to vector<16x256xf32>
      %87 = vector.broadcast %85 : f32 to vector<16x256xf32>
      %88 = arith.mulf %87, %86 : vector<16x256xf32>
      %89 = arith.addf %73, %88 : vector<16x256xf32>
      %90 = vector.extract_strided_slice %8 {offsets = [0, 5], sizes = [16, 1], strides = [1, 1]} : vector<16x32xbf16> to vector<16x1xbf16>
      %91 = vector.extract_strided_slice %1 {offsets = [5, 0], sizes = [1, 256], strides = [1, 1]} : vector<32x256xbf16> to vector<1x256xbf16>
      %92 = vector.broadcast %90 : vector<16x1xbf16> to vector<16x256xbf16>
      %93 = vector.broadcast %91 : vector<1x256xbf16> to vector<16x256xbf16>
      %94 = arith.addf %92, %93 : vector<16x256xbf16>
      %cst_15 = arith.constant 0.000000e+00 : bf16
      %95 = vector.broadcast %cst_15 : bf16 to vector<16x256xbf16>
      %96 = arith.cmpf ogt, %94, %95 : vector<16x256xbf16>
      %97 = math.exp %94 : vector<16x256xbf16>
      %cst_16 = arith.constant 1.000000e+00 : bf16
      %98 = vector.broadcast %cst_16 : bf16 to vector<16x256xbf16>
      %99 = arith.subf %97, %98 : vector<16x256xbf16>
      %100 = arith.select %96, %94, %99 : vector<16x256xi1>, vector<16x256xbf16>
      %c5 = arith.constant 5 : index
      %101 = memref.load %arg4[%c5] : memref<32xf32, #tpu.memory_space<smem>>
      %102 = arith.extf %100 : vector<16x256xbf16> to vector<16x256xf32>
      %103 = vector.broadcast %101 : f32 to vector<16x256xf32>
      %104 = arith.mulf %103, %102 : vector<16x256xf32>
      %105 = arith.addf %89, %104 : vector<16x256xf32>
      %106 = vector.extract_strided_slice %8 {offsets = [0, 6], sizes = [16, 1], strides = [1, 1]} : vector<16x32xbf16> to vector<16x1xbf16>
      %107 = vector.extract_strided_slice %1 {offsets = [6, 0], sizes = [1, 256], strides = [1, 1]} : vector<32x256xbf16> to vector<1x256xbf16>
      %108 = vector.broadcast %106 : vector<16x1xbf16> to vector<16x256xbf16>
      %109 = vector.broadcast %107 : vector<1x256xbf16> to vector<16x256xbf16>
      %110 = arith.addf %108, %109 : vector<16x256xbf16>
      %cst_17 = arith.constant 0.000000e+00 : bf16
      %111 = vector.broadcast %cst_17 : bf16 to vector<16x256xbf16>
      %112 = arith.cmpf ogt, %110, %111 : vector<16x256xbf16>
      %113 = math.exp %110 : vector<16x256xbf16>
      %cst_18 = arith.constant 1.000000e+00 : bf16
      %114 = vector.broadcast %cst_18 : bf16 to vector<16x256xbf16>
      %115 = arith.subf %113, %114 : vector<16x256xbf16>
      %116 = arith.select %112, %110, %115 : vector<16x256xi1>, vector<16x256xbf16>
      %c6 = arith.constant 6 : index
      %117 = memref.load %arg4[%c6] : memref<32xf32, #tpu.memory_space<smem>>
      %118 = arith.extf %116 : vector<16x256xbf16> to vector<16x256xf32>
      %119 = vector.broadcast %117 : f32 to vector<16x256xf32>
      %120 = arith.mulf %119, %118 : vector<16x256xf32>
      %121 = arith.addf %105, %120 : vector<16x256xf32>
      %122 = vector.extract_strided_slice %8 {offsets = [0, 7], sizes = [16, 1], strides = [1, 1]} : vector<16x32xbf16> to vector<16x1xbf16>
      %123 = vector.extract_strided_slice %1 {offsets = [7, 0], sizes = [1, 256], strides = [1, 1]} : vector<32x256xbf16> to vector<1x256xbf16>
      %124 = vector.broadcast %122 : vector<16x1xbf16> to vector<16x256xbf16>
      %125 = vector.broadcast %123 : vector<1x256xbf16> to vector<16x256xbf16>
      %126 = arith.addf %124, %125 : vector<16x256xbf16>
      %cst_19 = arith.constant 0.000000e+00 : bf16
      %127 = vector.broadcast %cst_19 : bf16 to vector<16x256xbf16>
      %128 = arith.cmpf ogt, %126, %127 : vector<16x256xbf16>
      %129 = math.exp %126 : vector<16x256xbf16>
      %cst_20 = arith.constant 1.000000e+00 : bf16
      %130 = vector.broadcast %cst_20 : bf16 to vector<16x256xbf16>
      %131 = arith.subf %129, %130 : vector<16x256xbf16>
      %132 = arith.select %128, %126, %131 : vector<16x256xi1>, vector<16x256xbf16>
      %c7 = arith.constant 7 : index
      %133 = memref.load %arg4[%c7] : memref<32xf32, #tpu.memory_space<smem>>
      %134 = arith.extf %132 : vector<16x256xbf16> to vector<16x256xf32>
      %135 = vector.broadcast %133 : f32 to vector<16x256xf32>
      %136 = arith.mulf %135, %134 : vector<16x256xf32>
      %137 = arith.addf %121, %136 : vector<16x256xf32>
      %138 = vector.extract_strided_slice %8 {offsets = [0, 8], sizes = [16, 1], strides = [1, 1]} : vector<16x32xbf16> to vector<16x1xbf16>
      %139 = vector.extract_strided_slice %1 {offsets = [8, 0], sizes = [1, 256], strides = [1, 1]} : vector<32x256xbf16> to vector<1x256xbf16>
      %140 = vector.broadcast %138 : vector<16x1xbf16> to vector<16x256xbf16>
      %141 = vector.broadcast %139 : vector<1x256xbf16> to vector<16x256xbf16>
      %142 = arith.addf %140, %141 : vector<16x256xbf16>
      %cst_21 = arith.constant 0.000000e+00 : bf16
      %143 = vector.broadcast %cst_21 : bf16 to vector<16x256xbf16>
      %144 = arith.cmpf ogt, %142, %143 : vector<16x256xbf16>
      %145 = math.exp %142 : vector<16x256xbf16>
      %cst_22 = arith.constant 1.000000e+00 : bf16
      %146 = vector.broadcast %cst_22 : bf16 to vector<16x256xbf16>
      %147 = arith.subf %145, %146 : vector<16x256xbf16>
      %148 = arith.select %144, %142, %147 : vector<16x256xi1>, vector<16x256xbf16>
      %c8 = arith.constant 8 : index
      %149 = memref.load %arg4[%c8] : memref<32xf32, #tpu.memory_space<smem>>
      %150 = arith.extf %148 : vector<16x256xbf16> to vector<16x256xf32>
      %151 = vector.broadcast %149 : f32 to vector<16x256xf32>
      %152 = arith.mulf %151, %150 : vector<16x256xf32>
      %153 = arith.addf %137, %152 : vector<16x256xf32>
      %154 = vector.extract_strided_slice %8 {offsets = [0, 9], sizes = [16, 1], strides = [1, 1]} : vector<16x32xbf16> to vector<16x1xbf16>
      %155 = vector.extract_strided_slice %1 {offsets = [9, 0], sizes = [1, 256], strides = [1, 1]} : vector<32x256xbf16> to vector<1x256xbf16>
      %156 = vector.broadcast %154 : vector<16x1xbf16> to vector<16x256xbf16>
      %157 = vector.broadcast %155 : vector<1x256xbf16> to vector<16x256xbf16>
      %158 = arith.addf %156, %157 : vector<16x256xbf16>
      %cst_23 = arith.constant 0.000000e+00 : bf16
      %159 = vector.broadcast %cst_23 : bf16 to vector<16x256xbf16>
      %160 = arith.cmpf ogt, %158, %159 : vector<16x256xbf16>
      %161 = math.exp %158 : vector<16x256xbf16>
      %cst_24 = arith.constant 1.000000e+00 : bf16
      %162 = vector.broadcast %cst_24 : bf16 to vector<16x256xbf16>
      %163 = arith.subf %161, %162 : vector<16x256xbf16>
      %164 = arith.select %160, %158, %163 : vector<16x256xi1>, vector<16x256xbf16>
      %c9 = arith.constant 9 : index
      %165 = memref.load %arg4[%c9] : memref<32xf32, #tpu.memory_space<smem>>
      %166 = arith.extf %164 : vector<16x256xbf16> to vector<16x256xf32>
      %167 = vector.broadcast %165 : f32 to vector<16x256xf32>
      %168 = arith.mulf %167, %166 : vector<16x256xf32>
      %169 = arith.addf %153, %168 : vector<16x256xf32>
      %170 = vector.extract_strided_slice %8 {offsets = [0, 10], sizes = [16, 1], strides = [1, 1]} : vector<16x32xbf16> to vector<16x1xbf16>
      %171 = vector.extract_strided_slice %1 {offsets = [10, 0], sizes = [1, 256], strides = [1, 1]} : vector<32x256xbf16> to vector<1x256xbf16>
      %172 = vector.broadcast %170 : vector<16x1xbf16> to vector<16x256xbf16>
      %173 = vector.broadcast %171 : vector<1x256xbf16> to vector<16x256xbf16>
      %174 = arith.addf %172, %173 : vector<16x256xbf16>
      %cst_25 = arith.constant 0.000000e+00 : bf16
      %175 = vector.broadcast %cst_25 : bf16 to vector<16x256xbf16>
      %176 = arith.cmpf ogt, %174, %175 : vector<16x256xbf16>
      %177 = math.exp %174 : vector<16x256xbf16>
      %cst_26 = arith.constant 1.000000e+00 : bf16
      %178 = vector.broadcast %cst_26 : bf16 to vector<16x256xbf16>
      %179 = arith.subf %177, %178 : vector<16x256xbf16>
      %180 = arith.select %176, %174, %179 : vector<16x256xi1>, vector<16x256xbf16>
      %c10 = arith.constant 10 : index
      %181 = memref.load %arg4[%c10] : memref<32xf32, #tpu.memory_space<smem>>
      %182 = arith.extf %180 : vector<16x256xbf16> to vector<16x256xf32>
      %183 = vector.broadcast %181 : f32 to vector<16x256xf32>
      %184 = arith.mulf %183, %182 : vector<16x256xf32>
      %185 = arith.addf %169, %184 : vector<16x256xf32>
      %186 = vector.extract_strided_slice %8 {offsets = [0, 11], sizes = [16, 1], strides = [1, 1]} : vector<16x32xbf16> to vector<16x1xbf16>
      %187 = vector.extract_strided_slice %1 {offsets = [11, 0], sizes = [1, 256], strides = [1, 1]} : vector<32x256xbf16> to vector<1x256xbf16>
      %188 = vector.broadcast %186 : vector<16x1xbf16> to vector<16x256xbf16>
      %189 = vector.broadcast %187 : vector<1x256xbf16> to vector<16x256xbf16>
      %190 = arith.addf %188, %189 : vector<16x256xbf16>
      %cst_27 = arith.constant 0.000000e+00 : bf16
      %191 = vector.broadcast %cst_27 : bf16 to vector<16x256xbf16>
      %192 = arith.cmpf ogt, %190, %191 : vector<16x256xbf16>
      %193 = math.exp %190 : vector<16x256xbf16>
      %cst_28 = arith.constant 1.000000e+00 : bf16
      %194 = vector.broadcast %cst_28 : bf16 to vector<16x256xbf16>
      %195 = arith.subf %193, %194 : vector<16x256xbf16>
      %196 = arith.select %192, %190, %195 : vector<16x256xi1>, vector<16x256xbf16>
      %c11 = arith.constant 11 : index
      %197 = memref.load %arg4[%c11] : memref<32xf32, #tpu.memory_space<smem>>
      %198 = arith.extf %196 : vector<16x256xbf16> to vector<16x256xf32>
      %199 = vector.broadcast %197 : f32 to vector<16x256xf32>
      %200 = arith.mulf %199, %198 : vector<16x256xf32>
      %201 = arith.addf %185, %200 : vector<16x256xf32>
      %202 = vector.extract_strided_slice %8 {offsets = [0, 12], sizes = [16, 1], strides = [1, 1]} : vector<16x32xbf16> to vector<16x1xbf16>
      %203 = vector.extract_strided_slice %1 {offsets = [12, 0], sizes = [1, 256], strides = [1, 1]} : vector<32x256xbf16> to vector<1x256xbf16>
      %204 = vector.broadcast %202 : vector<16x1xbf16> to vector<16x256xbf16>
      %205 = vector.broadcast %203 : vector<1x256xbf16> to vector<16x256xbf16>
      %206 = arith.addf %204, %205 : vector<16x256xbf16>
      %cst_29 = arith.constant 0.000000e+00 : bf16
      %207 = vector.broadcast %cst_29 : bf16 to vector<16x256xbf16>
      %208 = arith.cmpf ogt, %206, %207 : vector<16x256xbf16>
      %209 = math.exp %206 : vector<16x256xbf16>
      %cst_30 = arith.constant 1.000000e+00 : bf16
      %210 = vector.broadcast %cst_30 : bf16 to vector<16x256xbf16>
      %211 = arith.subf %209, %210 : vector<16x256xbf16>
      %212 = arith.select %208, %206, %211 : vector<16x256xi1>, vector<16x256xbf16>
      %c12 = arith.constant 12 : index
      %213 = memref.load %arg4[%c12] : memref<32xf32, #tpu.memory_space<smem>>
      %214 = arith.extf %212 : vector<16x256xbf16> to vector<16x256xf32>
      %215 = vector.broadcast %213 : f32 to vector<16x256xf32>
      %216 = arith.mulf %215, %214 : vector<16x256xf32>
      %217 = arith.addf %201, %216 : vector<16x256xf32>
      %218 = vector.extract_strided_slice %8 {offsets = [0, 13], sizes = [16, 1], strides = [1, 1]} : vector<16x32xbf16> to vector<16x1xbf16>
      %219 = vector.extract_strided_slice %1 {offsets = [13, 0], sizes = [1, 256], strides = [1, 1]} : vector<32x256xbf16> to vector<1x256xbf16>
      %220 = vector.broadcast %218 : vector<16x1xbf16> to vector<16x256xbf16>
      %221 = vector.broadcast %219 : vector<1x256xbf16> to vector<16x256xbf16>
      %222 = arith.addf %220, %221 : vector<16x256xbf16>
      %cst_31 = arith.constant 0.000000e+00 : bf16
      %223 = vector.broadcast %cst_31 : bf16 to vector<16x256xbf16>
      %224 = arith.cmpf ogt, %222, %223 : vector<16x256xbf16>
      %225 = math.exp %222 : vector<16x256xbf16>
      %cst_32 = arith.constant 1.000000e+00 : bf16
      %226 = vector.broadcast %cst_32 : bf16 to vector<16x256xbf16>
      %227 = arith.subf %225, %226 : vector<16x256xbf16>
      %228 = arith.select %224, %222, %227 : vector<16x256xi1>, vector<16x256xbf16>
      %c13 = arith.constant 13 : index
      %229 = memref.load %arg4[%c13] : memref<32xf32, #tpu.memory_space<smem>>
      %230 = arith.extf %228 : vector<16x256xbf16> to vector<16x256xf32>
      %231 = vector.broadcast %229 : f32 to vector<16x256xf32>
      %232 = arith.mulf %231, %230 : vector<16x256xf32>
      %233 = arith.addf %217, %232 : vector<16x256xf32>
      %234 = vector.extract_strided_slice %8 {offsets = [0, 14], sizes = [16, 1], strides = [1, 1]} : vector<16x32xbf16> to vector<16x1xbf16>
      %235 = vector.extract_strided_slice %1 {offsets = [14, 0], sizes = [1, 256], strides = [1, 1]} : vector<32x256xbf16> to vector<1x256xbf16>
      %236 = vector.broadcast %234 : vector<16x1xbf16> to vector<16x256xbf16>
      %237 = vector.broadcast %235 : vector<1x256xbf16> to vector<16x256xbf16>
      %238 = arith.addf %236, %237 : vector<16x256xbf16>
      %cst_33 = arith.constant 0.000000e+00 : bf16
      %239 = vector.broadcast %cst_33 : bf16 to vector<16x256xbf16>
      %240 = arith.cmpf ogt, %238, %239 : vector<16x256xbf16>
      %241 = math.exp %238 : vector<16x256xbf16>
      %cst_34 = arith.constant 1.000000e+00 : bf16
      %242 = vector.broadcast %cst_34 : bf16 to vector<16x256xbf16>
      %243 = arith.subf %241, %242 : vector<16x256xbf16>
      %244 = arith.select %240, %238, %243 : vector<16x256xi1>, vector<16x256xbf16>
      %c14 = arith.constant 14 : index
      %245 = memref.load %arg4[%c14] : memref<32xf32, #tpu.memory_space<smem>>
      %246 = arith.extf %244 : vector<16x256xbf16> to vector<16x256xf32>
      %247 = vector.broadcast %245 : f32 to vector<16x256xf32>
      %248 = arith.mulf %247, %246 : vector<16x256xf32>
      %249 = arith.addf %233, %248 : vector<16x256xf32>
      %250 = vector.extract_strided_slice %8 {offsets = [0, 15], sizes = [16, 1], strides = [1, 1]} : vector<16x32xbf16> to vector<16x1xbf16>
      %251 = vector.extract_strided_slice %1 {offsets = [15, 0], sizes = [1, 256], strides = [1, 1]} : vector<32x256xbf16> to vector<1x256xbf16>
      %252 = vector.broadcast %250 : vector<16x1xbf16> to vector<16x256xbf16>
      %253 = vector.broadcast %251 : vector<1x256xbf16> to vector<16x256xbf16>
      %254 = arith.addf %252, %253 : vector<16x256xbf16>
      %cst_35 = arith.constant 0.000000e+00 : bf16
      %255 = vector.broadcast %cst_35 : bf16 to vector<16x256xbf16>
      %256 = arith.cmpf ogt, %254, %255 : vector<16x256xbf16>
      %257 = math.exp %254 : vector<16x256xbf16>
      %cst_36 = arith.constant 1.000000e+00 : bf16
      %258 = vector.broadcast %cst_36 : bf16 to vector<16x256xbf16>
      %259 = arith.subf %257, %258 : vector<16x256xbf16>
      %260 = arith.select %256, %254, %259 : vector<16x256xi1>, vector<16x256xbf16>
      %c15 = arith.constant 15 : index
      %261 = memref.load %arg4[%c15] : memref<32xf32, #tpu.memory_space<smem>>
      %262 = arith.extf %260 : vector<16x256xbf16> to vector<16x256xf32>
      %263 = vector.broadcast %261 : f32 to vector<16x256xf32>
      %264 = arith.mulf %263, %262 : vector<16x256xf32>
      %265 = arith.addf %249, %264 : vector<16x256xf32>
      %266 = vector.extract_strided_slice %8 {offsets = [0, 16], sizes = [16, 1], strides = [1, 1]} : vector<16x32xbf16> to vector<16x1xbf16>
      %267 = vector.extract_strided_slice %1 {offsets = [16, 0], sizes = [1, 256], strides = [1, 1]} : vector<32x256xbf16> to vector<1x256xbf16>
      %268 = vector.broadcast %266 : vector<16x1xbf16> to vector<16x256xbf16>
      %269 = vector.broadcast %267 : vector<1x256xbf16> to vector<16x256xbf16>
      %270 = arith.addf %268, %269 : vector<16x256xbf16>
      %cst_37 = arith.constant 0.000000e+00 : bf16
      %271 = vector.broadcast %cst_37 : bf16 to vector<16x256xbf16>
      %272 = arith.cmpf ogt, %270, %271 : vector<16x256xbf16>
      %273 = math.exp %270 : vector<16x256xbf16>
      %cst_38 = arith.constant 1.000000e+00 : bf16
      %274 = vector.broadcast %cst_38 : bf16 to vector<16x256xbf16>
      %275 = arith.subf %273, %274 : vector<16x256xbf16>
      %276 = arith.select %272, %270, %275 : vector<16x256xi1>, vector<16x256xbf16>
      %c16 = arith.constant 16 : index
      %277 = memref.load %arg4[%c16] : memref<32xf32, #tpu.memory_space<smem>>
      %278 = arith.extf %276 : vector<16x256xbf16> to vector<16x256xf32>
      %279 = vector.broadcast %277 : f32 to vector<16x256xf32>
      %280 = arith.mulf %279, %278 : vector<16x256xf32>
      %281 = arith.addf %265, %280 : vector<16x256xf32>
      %282 = vector.extract_strided_slice %8 {offsets = [0, 17], sizes = [16, 1], strides = [1, 1]} : vector<16x32xbf16> to vector<16x1xbf16>
      %283 = vector.extract_strided_slice %1 {offsets = [17, 0], sizes = [1, 256], strides = [1, 1]} : vector<32x256xbf16> to vector<1x256xbf16>
      %284 = vector.broadcast %282 : vector<16x1xbf16> to vector<16x256xbf16>
      %285 = vector.broadcast %283 : vector<1x256xbf16> to vector<16x256xbf16>
      %286 = arith.addf %284, %285 : vector<16x256xbf16>
      %cst_39 = arith.constant 0.000000e+00 : bf16
      %287 = vector.broadcast %cst_39 : bf16 to vector<16x256xbf16>
      %288 = arith.cmpf ogt, %286, %287 : vector<16x256xbf16>
      %289 = math.exp %286 : vector<16x256xbf16>
      %cst_40 = arith.constant 1.000000e+00 : bf16
      %290 = vector.broadcast %cst_40 : bf16 to vector<16x256xbf16>
      %291 = arith.subf %289, %290 : vector<16x256xbf16>
      %292 = arith.select %288, %286, %291 : vector<16x256xi1>, vector<16x256xbf16>
      %c17 = arith.constant 17 : index
      %293 = memref.load %arg4[%c17] : memref<32xf32, #tpu.memory_space<smem>>
      %294 = arith.extf %292 : vector<16x256xbf16> to vector<16x256xf32>
      %295 = vector.broadcast %293 : f32 to vector<16x256xf32>
      %296 = arith.mulf %295, %294 : vector<16x256xf32>
      %297 = arith.addf %281, %296 : vector<16x256xf32>
      %298 = vector.extract_strided_slice %8 {offsets = [0, 18], sizes = [16, 1], strides = [1, 1]} : vector<16x32xbf16> to vector<16x1xbf16>
      %299 = vector.extract_strided_slice %1 {offsets = [18, 0], sizes = [1, 256], strides = [1, 1]} : vector<32x256xbf16> to vector<1x256xbf16>
      %300 = vector.broadcast %298 : vector<16x1xbf16> to vector<16x256xbf16>
      %301 = vector.broadcast %299 : vector<1x256xbf16> to vector<16x256xbf16>
      %302 = arith.addf %300, %301 : vector<16x256xbf16>
      %cst_41 = arith.constant 0.000000e+00 : bf16
      %303 = vector.broadcast %cst_41 : bf16 to vector<16x256xbf16>
      %304 = arith.cmpf ogt, %302, %303 : vector<16x256xbf16>
      %305 = math.exp %302 : vector<16x256xbf16>
      %cst_42 = arith.constant 1.000000e+00 : bf16
      %306 = vector.broadcast %cst_42 : bf16 to vector<16x256xbf16>
      %307 = arith.subf %305, %306 : vector<16x256xbf16>
      %308 = arith.select %304, %302, %307 : vector<16x256xi1>, vector<16x256xbf16>
      %c18 = arith.constant 18 : index
      %309 = memref.load %arg4[%c18] : memref<32xf32, #tpu.memory_space<smem>>
      %310 = arith.extf %308 : vector<16x256xbf16> to vector<16x256xf32>
      %311 = vector.broadcast %309 : f32 to vector<16x256xf32>
      %312 = arith.mulf %311, %310 : vector<16x256xf32>
      %313 = arith.addf %297, %312 : vector<16x256xf32>
      %314 = vector.extract_strided_slice %8 {offsets = [0, 19], sizes = [16, 1], strides = [1, 1]} : vector<16x32xbf16> to vector<16x1xbf16>
      %315 = vector.extract_strided_slice %1 {offsets = [19, 0], sizes = [1, 256], strides = [1, 1]} : vector<32x256xbf16> to vector<1x256xbf16>
      %316 = vector.broadcast %314 : vector<16x1xbf16> to vector<16x256xbf16>
      %317 = vector.broadcast %315 : vector<1x256xbf16> to vector<16x256xbf16>
      %318 = arith.addf %316, %317 : vector<16x256xbf16>
      %cst_43 = arith.constant 0.000000e+00 : bf16
      %319 = vector.broadcast %cst_43 : bf16 to vector<16x256xbf16>
      %320 = arith.cmpf ogt, %318, %319 : vector<16x256xbf16>
      %321 = math.exp %318 : vector<16x256xbf16>
      %cst_44 = arith.constant 1.000000e+00 : bf16
      %322 = vector.broadcast %cst_44 : bf16 to vector<16x256xbf16>
      %323 = arith.subf %321, %322 : vector<16x256xbf16>
      %324 = arith.select %320, %318, %323 : vector<16x256xi1>, vector<16x256xbf16>
      %c19 = arith.constant 19 : index
      %325 = memref.load %arg4[%c19] : memref<32xf32, #tpu.memory_space<smem>>
      %326 = arith.extf %324 : vector<16x256xbf16> to vector<16x256xf32>
      %327 = vector.broadcast %325 : f32 to vector<16x256xf32>
      %328 = arith.mulf %327, %326 : vector<16x256xf32>
      %329 = arith.addf %313, %328 : vector<16x256xf32>
      %330 = vector.extract_strided_slice %8 {offsets = [0, 20], sizes = [16, 1], strides = [1, 1]} : vector<16x32xbf16> to vector<16x1xbf16>
      %331 = vector.extract_strided_slice %1 {offsets = [20, 0], sizes = [1, 256], strides = [1, 1]} : vector<32x256xbf16> to vector<1x256xbf16>
      %332 = vector.broadcast %330 : vector<16x1xbf16> to vector<16x256xbf16>
      %333 = vector.broadcast %331 : vector<1x256xbf16> to vector<16x256xbf16>
      %334 = arith.addf %332, %333 : vector<16x256xbf16>
      %cst_45 = arith.constant 0.000000e+00 : bf16
      %335 = vector.broadcast %cst_45 : bf16 to vector<16x256xbf16>
      %336 = arith.cmpf ogt, %334, %335 : vector<16x256xbf16>
      %337 = math.exp %334 : vector<16x256xbf16>
      %cst_46 = arith.constant 1.000000e+00 : bf16
      %338 = vector.broadcast %cst_46 : bf16 to vector<16x256xbf16>
      %339 = arith.subf %337, %338 : vector<16x256xbf16>
      %340 = arith.select %336, %334, %339 : vector<16x256xi1>, vector<16x256xbf16>
      %c20 = arith.constant 20 : index
      %341 = memref.load %arg4[%c20] : memref<32xf32, #tpu.memory_space<smem>>
      %342 = arith.extf %340 : vector<16x256xbf16> to vector<16x256xf32>
      %343 = vector.broadcast %341 : f32 to vector<16x256xf32>
      %344 = arith.mulf %343, %342 : vector<16x256xf32>
      %345 = arith.addf %329, %344 : vector<16x256xf32>
      %346 = vector.extract_strided_slice %8 {offsets = [0, 21], sizes = [16, 1], strides = [1, 1]} : vector<16x32xbf16> to vector<16x1xbf16>
      %347 = vector.extract_strided_slice %1 {offsets = [21, 0], sizes = [1, 256], strides = [1, 1]} : vector<32x256xbf16> to vector<1x256xbf16>
      %348 = vector.broadcast %346 : vector<16x1xbf16> to vector<16x256xbf16>
      %349 = vector.broadcast %347 : vector<1x256xbf16> to vector<16x256xbf16>
      %350 = arith.addf %348, %349 : vector<16x256xbf16>
      %cst_47 = arith.constant 0.000000e+00 : bf16
      %351 = vector.broadcast %cst_47 : bf16 to vector<16x256xbf16>
      %352 = arith.cmpf ogt, %350, %351 : vector<16x256xbf16>
      %353 = math.exp %350 : vector<16x256xbf16>
      %cst_48 = arith.constant 1.000000e+00 : bf16
      %354 = vector.broadcast %cst_48 : bf16 to vector<16x256xbf16>
      %355 = arith.subf %353, %354 : vector<16x256xbf16>
      %356 = arith.select %352, %350, %355 : vector<16x256xi1>, vector<16x256xbf16>
      %c21 = arith.constant 21 : index
      %357 = memref.load %arg4[%c21] : memref<32xf32, #tpu.memory_space<smem>>
      %358 = arith.extf %356 : vector<16x256xbf16> to vector<16x256xf32>
      %359 = vector.broadcast %357 : f32 to vector<16x256xf32>
      %360 = arith.mulf %359, %358 : vector<16x256xf32>
      %361 = arith.addf %345, %360 : vector<16x256xf32>
      %362 = vector.extract_strided_slice %8 {offsets = [0, 22], sizes = [16, 1], strides = [1, 1]} : vector<16x32xbf16> to vector<16x1xbf16>
      %363 = vector.extract_strided_slice %1 {offsets = [22, 0], sizes = [1, 256], strides = [1, 1]} : vector<32x256xbf16> to vector<1x256xbf16>
      %364 = vector.broadcast %362 : vector<16x1xbf16> to vector<16x256xbf16>
      %365 = vector.broadcast %363 : vector<1x256xbf16> to vector<16x256xbf16>
      %366 = arith.addf %364, %365 : vector<16x256xbf16>
      %cst_49 = arith.constant 0.000000e+00 : bf16
      %367 = vector.broadcast %cst_49 : bf16 to vector<16x256xbf16>
      %368 = arith.cmpf ogt, %366, %367 : vector<16x256xbf16>
      %369 = math.exp %366 : vector<16x256xbf16>
      %cst_50 = arith.constant 1.000000e+00 : bf16
      %370 = vector.broadcast %cst_50 : bf16 to vector<16x256xbf16>
      %371 = arith.subf %369, %370 : vector<16x256xbf16>
      %372 = arith.select %368, %366, %371 : vector<16x256xi1>, vector<16x256xbf16>
      %c22 = arith.constant 22 : index
      %373 = memref.load %arg4[%c22] : memref<32xf32, #tpu.memory_space<smem>>
      %374 = arith.extf %372 : vector<16x256xbf16> to vector<16x256xf32>
      %375 = vector.broadcast %373 : f32 to vector<16x256xf32>
      %376 = arith.mulf %375, %374 : vector<16x256xf32>
      %377 = arith.addf %361, %376 : vector<16x256xf32>
      %378 = vector.extract_strided_slice %8 {offsets = [0, 23], sizes = [16, 1], strides = [1, 1]} : vector<16x32xbf16> to vector<16x1xbf16>
      %379 = vector.extract_strided_slice %1 {offsets = [23, 0], sizes = [1, 256], strides = [1, 1]} : vector<32x256xbf16> to vector<1x256xbf16>
      %380 = vector.broadcast %378 : vector<16x1xbf16> to vector<16x256xbf16>
      %381 = vector.broadcast %379 : vector<1x256xbf16> to vector<16x256xbf16>
      %382 = arith.addf %380, %381 : vector<16x256xbf16>
      %cst_51 = arith.constant 0.000000e+00 : bf16
      %383 = vector.broadcast %cst_51 : bf16 to vector<16x256xbf16>
      %384 = arith.cmpf ogt, %382, %383 : vector<16x256xbf16>
      %385 = math.exp %382 : vector<16x256xbf16>
      %cst_52 = arith.constant 1.000000e+00 : bf16
      %386 = vector.broadcast %cst_52 : bf16 to vector<16x256xbf16>
      %387 = arith.subf %385, %386 : vector<16x256xbf16>
      %388 = arith.select %384, %382, %387 : vector<16x256xi1>, vector<16x256xbf16>
      %c23 = arith.constant 23 : index
      %389 = memref.load %arg4[%c23] : memref<32xf32, #tpu.memory_space<smem>>
      %390 = arith.extf %388 : vector<16x256xbf16> to vector<16x256xf32>
      %391 = vector.broadcast %389 : f32 to vector<16x256xf32>
      %392 = arith.mulf %391, %390 : vector<16x256xf32>
      %393 = arith.addf %377, %392 : vector<16x256xf32>
      %394 = vector.extract_strided_slice %8 {offsets = [0, 24], sizes = [16, 1], strides = [1, 1]} : vector<16x32xbf16> to vector<16x1xbf16>
      %395 = vector.extract_strided_slice %1 {offsets = [24, 0], sizes = [1, 256], strides = [1, 1]} : vector<32x256xbf16> to vector<1x256xbf16>
      %396 = vector.broadcast %394 : vector<16x1xbf16> to vector<16x256xbf16>
      %397 = vector.broadcast %395 : vector<1x256xbf16> to vector<16x256xbf16>
      %398 = arith.addf %396, %397 : vector<16x256xbf16>
      %cst_53 = arith.constant 0.000000e+00 : bf16
      %399 = vector.broadcast %cst_53 : bf16 to vector<16x256xbf16>
      %400 = arith.cmpf ogt, %398, %399 : vector<16x256xbf16>
      %401 = math.exp %398 : vector<16x256xbf16>
      %cst_54 = arith.constant 1.000000e+00 : bf16
      %402 = vector.broadcast %cst_54 : bf16 to vector<16x256xbf16>
      %403 = arith.subf %401, %402 : vector<16x256xbf16>
      %404 = arith.select %400, %398, %403 : vector<16x256xi1>, vector<16x256xbf16>
      %c24 = arith.constant 24 : index
      %405 = memref.load %arg4[%c24] : memref<32xf32, #tpu.memory_space<smem>>
      %406 = arith.extf %404 : vector<16x256xbf16> to vector<16x256xf32>
      %407 = vector.broadcast %405 : f32 to vector<16x256xf32>
      %408 = arith.mulf %407, %406 : vector<16x256xf32>
      %409 = arith.addf %393, %408 : vector<16x256xf32>
      %410 = vector.extract_strided_slice %8 {offsets = [0, 25], sizes = [16, 1], strides = [1, 1]} : vector<16x32xbf16> to vector<16x1xbf16>
      %411 = vector.extract_strided_slice %1 {offsets = [25, 0], sizes = [1, 256], strides = [1, 1]} : vector<32x256xbf16> to vector<1x256xbf16>
      %412 = vector.broadcast %410 : vector<16x1xbf16> to vector<16x256xbf16>
      %413 = vector.broadcast %411 : vector<1x256xbf16> to vector<16x256xbf16>
      %414 = arith.addf %412, %413 : vector<16x256xbf16>
      %cst_55 = arith.constant 0.000000e+00 : bf16
      %415 = vector.broadcast %cst_55 : bf16 to vector<16x256xbf16>
      %416 = arith.cmpf ogt, %414, %415 : vector<16x256xbf16>
      %417 = math.exp %414 : vector<16x256xbf16>
      %cst_56 = arith.constant 1.000000e+00 : bf16
      %418 = vector.broadcast %cst_56 : bf16 to vector<16x256xbf16>
      %419 = arith.subf %417, %418 : vector<16x256xbf16>
      %420 = arith.select %416, %414, %419 : vector<16x256xi1>, vector<16x256xbf16>
      %c25 = arith.constant 25 : index
      %421 = memref.load %arg4[%c25] : memref<32xf32, #tpu.memory_space<smem>>
      %422 = arith.extf %420 : vector<16x256xbf16> to vector<16x256xf32>
      %423 = vector.broadcast %421 : f32 to vector<16x256xf32>
      %424 = arith.mulf %423, %422 : vector<16x256xf32>
      %425 = arith.addf %409, %424 : vector<16x256xf32>
      %426 = vector.extract_strided_slice %8 {offsets = [0, 26], sizes = [16, 1], strides = [1, 1]} : vector<16x32xbf16> to vector<16x1xbf16>
      %427 = vector.extract_strided_slice %1 {offsets = [26, 0], sizes = [1, 256], strides = [1, 1]} : vector<32x256xbf16> to vector<1x256xbf16>
      %428 = vector.broadcast %426 : vector<16x1xbf16> to vector<16x256xbf16>
      %429 = vector.broadcast %427 : vector<1x256xbf16> to vector<16x256xbf16>
      %430 = arith.addf %428, %429 : vector<16x256xbf16>
      %cst_57 = arith.constant 0.000000e+00 : bf16
      %431 = vector.broadcast %cst_57 : bf16 to vector<16x256xbf16>
      %432 = arith.cmpf ogt, %430, %431 : vector<16x256xbf16>
      %433 = math.exp %430 : vector<16x256xbf16>
      %cst_58 = arith.constant 1.000000e+00 : bf16
      %434 = vector.broadcast %cst_58 : bf16 to vector<16x256xbf16>
      %435 = arith.subf %433, %434 : vector<16x256xbf16>
      %436 = arith.select %432, %430, %435 : vector<16x256xi1>, vector<16x256xbf16>
      %c26 = arith.constant 26 : index
      %437 = memref.load %arg4[%c26] : memref<32xf32, #tpu.memory_space<smem>>
      %438 = arith.extf %436 : vector<16x256xbf16> to vector<16x256xf32>
      %439 = vector.broadcast %437 : f32 to vector<16x256xf32>
      %440 = arith.mulf %439, %438 : vector<16x256xf32>
      %441 = arith.addf %425, %440 : vector<16x256xf32>
      %442 = vector.extract_strided_slice %8 {offsets = [0, 27], sizes = [16, 1], strides = [1, 1]} : vector<16x32xbf16> to vector<16x1xbf16>
      %443 = vector.extract_strided_slice %1 {offsets = [27, 0], sizes = [1, 256], strides = [1, 1]} : vector<32x256xbf16> to vector<1x256xbf16>
      %444 = vector.broadcast %442 : vector<16x1xbf16> to vector<16x256xbf16>
      %445 = vector.broadcast %443 : vector<1x256xbf16> to vector<16x256xbf16>
      %446 = arith.addf %444, %445 : vector<16x256xbf16>
      %cst_59 = arith.constant 0.000000e+00 : bf16
      %447 = vector.broadcast %cst_59 : bf16 to vector<16x256xbf16>
      %448 = arith.cmpf ogt, %446, %447 : vector<16x256xbf16>
      %449 = math.exp %446 : vector<16x256xbf16>
      %cst_60 = arith.constant 1.000000e+00 : bf16
      %450 = vector.broadcast %cst_60 : bf16 to vector<16x256xbf16>
      %451 = arith.subf %449, %450 : vector<16x256xbf16>
      %452 = arith.select %448, %446, %451 : vector<16x256xi1>, vector<16x256xbf16>
      %c27 = arith.constant 27 : index
      %453 = memref.load %arg4[%c27] : memref<32xf32, #tpu.memory_space<smem>>
      %454 = arith.extf %452 : vector<16x256xbf16> to vector<16x256xf32>
      %455 = vector.broadcast %453 : f32 to vector<16x256xf32>
      %456 = arith.mulf %455, %454 : vector<16x256xf32>
      %457 = arith.addf %441, %456 : vector<16x256xf32>
      %458 = vector.extract_strided_slice %8 {offsets = [0, 28], sizes = [16, 1], strides = [1, 1]} : vector<16x32xbf16> to vector<16x1xbf16>
      %459 = vector.extract_strided_slice %1 {offsets = [28, 0], sizes = [1, 256], strides = [1, 1]} : vector<32x256xbf16> to vector<1x256xbf16>
      %460 = vector.broadcast %458 : vector<16x1xbf16> to vector<16x256xbf16>
      %461 = vector.broadcast %459 : vector<1x256xbf16> to vector<16x256xbf16>
      %462 = arith.addf %460, %461 : vector<16x256xbf16>
      %cst_61 = arith.constant 0.000000e+00 : bf16
      %463 = vector.broadcast %cst_61 : bf16 to vector<16x256xbf16>
      %464 = arith.cmpf ogt, %462, %463 : vector<16x256xbf16>
      %465 = math.exp %462 : vector<16x256xbf16>
      %cst_62 = arith.constant 1.000000e+00 : bf16
      %466 = vector.broadcast %cst_62 : bf16 to vector<16x256xbf16>
      %467 = arith.subf %465, %466 : vector<16x256xbf16>
      %468 = arith.select %464, %462, %467 : vector<16x256xi1>, vector<16x256xbf16>
      %c28 = arith.constant 28 : index
      %469 = memref.load %arg4[%c28] : memref<32xf32, #tpu.memory_space<smem>>
      %470 = arith.extf %468 : vector<16x256xbf16> to vector<16x256xf32>
      %471 = vector.broadcast %469 : f32 to vector<16x256xf32>
      %472 = arith.mulf %471, %470 : vector<16x256xf32>
      %473 = arith.addf %457, %472 : vector<16x256xf32>
      %474 = vector.extract_strided_slice %8 {offsets = [0, 29], sizes = [16, 1], strides = [1, 1]} : vector<16x32xbf16> to vector<16x1xbf16>
      %475 = vector.extract_strided_slice %1 {offsets = [29, 0], sizes = [1, 256], strides = [1, 1]} : vector<32x256xbf16> to vector<1x256xbf16>
      %476 = vector.broadcast %474 : vector<16x1xbf16> to vector<16x256xbf16>
      %477 = vector.broadcast %475 : vector<1x256xbf16> to vector<16x256xbf16>
      %478 = arith.addf %476, %477 : vector<16x256xbf16>
      %cst_63 = arith.constant 0.000000e+00 : bf16
      %479 = vector.broadcast %cst_63 : bf16 to vector<16x256xbf16>
      %480 = arith.cmpf ogt, %478, %479 : vector<16x256xbf16>
      %481 = math.exp %478 : vector<16x256xbf16>
      %cst_64 = arith.constant 1.000000e+00 : bf16
      %482 = vector.broadcast %cst_64 : bf16 to vector<16x256xbf16>
      %483 = arith.subf %481, %482 : vector<16x256xbf16>
      %484 = arith.select %480, %478, %483 : vector<16x256xi1>, vector<16x256xbf16>
      %c29 = arith.constant 29 : index
      %485 = memref.load %arg4[%c29] : memref<32xf32, #tpu.memory_space<smem>>
      %486 = arith.extf %484 : vector<16x256xbf16> to vector<16x256xf32>
      %487 = vector.broadcast %485 : f32 to vector<16x256xf32>
      %488 = arith.mulf %487, %486 : vector<16x256xf32>
      %489 = arith.addf %473, %488 : vector<16x256xf32>
      %490 = vector.extract_strided_slice %8 {offsets = [0, 30], sizes = [16, 1], strides = [1, 1]} : vector<16x32xbf16> to vector<16x1xbf16>
      %491 = vector.extract_strided_slice %1 {offsets = [30, 0], sizes = [1, 256], strides = [1, 1]} : vector<32x256xbf16> to vector<1x256xbf16>
      %492 = vector.broadcast %490 : vector<16x1xbf16> to vector<16x256xbf16>
      %493 = vector.broadcast %491 : vector<1x256xbf16> to vector<16x256xbf16>
      %494 = arith.addf %492, %493 : vector<16x256xbf16>
      %cst_65 = arith.constant 0.000000e+00 : bf16
      %495 = vector.broadcast %cst_65 : bf16 to vector<16x256xbf16>
      %496 = arith.cmpf ogt, %494, %495 : vector<16x256xbf16>
      %497 = math.exp %494 : vector<16x256xbf16>
      %cst_66 = arith.constant 1.000000e+00 : bf16
      %498 = vector.broadcast %cst_66 : bf16 to vector<16x256xbf16>
      %499 = arith.subf %497, %498 : vector<16x256xbf16>
      %500 = arith.select %496, %494, %499 : vector<16x256xi1>, vector<16x256xbf16>
      %c30 = arith.constant 30 : index
      %501 = memref.load %arg4[%c30] : memref<32xf32, #tpu.memory_space<smem>>
      %502 = arith.extf %500 : vector<16x256xbf16> to vector<16x256xf32>
      %503 = vector.broadcast %501 : f32 to vector<16x256xf32>
      %504 = arith.mulf %503, %502 : vector<16x256xf32>
      %505 = arith.addf %489, %504 : vector<16x256xf32>
      %506 = vector.extract_strided_slice %8 {offsets = [0, 31], sizes = [16, 1], strides = [1, 1]} : vector<16x32xbf16> to vector<16x1xbf16>
      %507 = vector.extract_strided_slice %1 {offsets = [31, 0], sizes = [1, 256], strides = [1, 1]} : vector<32x256xbf16> to vector<1x256xbf16>
      %508 = vector.broadcast %506 : vector<16x1xbf16> to vector<16x256xbf16>
      %509 = vector.broadcast %507 : vector<1x256xbf16> to vector<16x256xbf16>
      %510 = arith.addf %508, %509 : vector<16x256xbf16>
      %cst_67 = arith.constant 0.000000e+00 : bf16
      %511 = vector.broadcast %cst_67 : bf16 to vector<16x256xbf16>
      %512 = arith.cmpf ogt, %510, %511 : vector<16x256xbf16>
      %513 = math.exp %510 : vector<16x256xbf16>
      %cst_68 = arith.constant 1.000000e+00 : bf16
      %514 = vector.broadcast %cst_68 : bf16 to vector<16x256xbf16>
      %515 = arith.subf %513, %514 : vector<16x256xbf16>
      %516 = arith.select %512, %510, %515 : vector<16x256xi1>, vector<16x256xbf16>
      %c31 = arith.constant 31 : index
      %517 = memref.load %arg4[%c31] : memref<32xf32, #tpu.memory_space<smem>>
      %518 = arith.extf %516 : vector<16x256xbf16> to vector<16x256xf32>
      %519 = vector.broadcast %517 : f32 to vector<16x256xf32>
      %520 = arith.mulf %519, %518 : vector<16x256xf32>
      %521 = arith.addf %505, %520 : vector<16x256xf32>
      %522 = vector.broadcast %2 : f32 to vector<16x256xf32>
      %523 = arith.addf %521, %522 : vector<16x256xf32>
      %cst_69 = arith.constant 0.000000e+00 : f32
      %524 = vector.broadcast %cst_69 : f32 to vector<16x256xf32>
      %525 = arith.subf %524, %523 : vector<16x256xf32>
      %526 = math.exp %525 : vector<16x256xf32>
      %cst_70 = arith.constant 1.000000e+00 : f32
      %527 = vector.broadcast %cst_70 : f32 to vector<16x256xf32>
      %528 = arith.addf %527, %526 : vector<16x256xf32>
      %529 = tpu.reciprocal %528 {approx = true} : vector<16x256xf32> -> vector<16x256xf32>
      %530 = arith.truncf %529 : vector<16x256xf32> to vector<16x256xbf16>
      %531 = arith.index_cast %5 : i32 to index
      %c0_71 = arith.constant 0 : index
      %532 = vector.load %arg6[%531, %c0_71] : memref<512x256xbf16, #tpu.memory_space<vmem>>, vector<16x256xbf16>
      tpu.vector_store %arg6[%531, %c0_71], %530 {strides = array<i32>} : memref<512x256xbf16, #tpu.memory_space<vmem>>, vector<16x256xbf16>,
    }
    %c32_i32_2 = arith.constant 32 : i32
    return
  }
  func.func @transform_0(%arg0: i32, %arg1: i32) -> (i32, i32) {
    %c0_i32 = arith.constant 0 : i32
    %c0_i32_0 = arith.constant 0 : i32
    return %arg0, %c0_i32 : i32, i32
  }
  func.func @transform_1(%arg0: i32, %arg1: i32) -> (i32, i32) {
    %c0_i32 = arith.constant 0 : i32
    %c0_i32_0 = arith.constant 0 : i32
    return %c0_i32, %arg1 : i32, i32
  }
  func.func @transform_2(%arg0: i32, %arg1: i32) -> i32 {
    %c0_i32 = arith.constant 0 : i32
    %c0_i32_0 = arith.constant 0 : i32
    return %c0_i32 : i32
  }
  func.func @transform_3(%arg0: i32, %arg1: i32) -> i32 {
    %c0_i32 = arith.constant 0 : i32
    %c0_i32_0 = arith.constant 0 : i32
    return %c0_i32 : i32
  }
  func.func @transform_4(%arg0: i32, %arg1: i32) -> (i32, i32) {
    %c0_i32 = arith.constant 0 : i32
    return %arg0, %arg1 : i32, i32
  }
}

</mosaic_0001>

<bundles_post_ra>
// kernel: pairwise_scores.1
= control target key start
LH: loop header
LB: loop body
LE: loop exit
PB: predicated region body
PF: predicated region fallthrough
CT: control target
= control target key end

     0   :  { %s3880_s0 = inlined_call_operand.vmem [shape: f32[512,32], index: 0, kind: input, shape index: {}]   ;;  %s3881_s1 = inlined_call_operand.vmem [shape: f32[32,512], index: 1, kind: input, shape index: {}]   ;;  %s3882_s2 = inlined_call_operand.vmem [shape: f32[32], index: 2, kind: input, shape index: {}]   ;;  %s3883_s3 = inlined_call_operand.<no memory space> [shape: f32[1], index: 3, kind: input, shape index: {}]   ;;  %s3884_s4 = inlined_call_operand.vmem [shape: bf16[512,512], index: 4, kind: output, shape index: {}]  }
   0x1   :  { %9 = sst [smem:[#allocation2]] %s3883_s3 }
   0x2   :  { %10 = vsyncpa [#allocation5], 0  ;;  %s2513_s17 = smov 0   ;;  %s2515_s18 = smov 0  }
   0x3   :  { %s2517_s19 = smov 0   ;;  %s2519_s20 = smov 0  }
   0x4   :  { %s2521_s21 = smov 0  }
   0x5 LB: > { %s2056_s3 = sadd.s32 4294967295, %s2445_s21   ;;  %s25_s22 = sadd.s32 1, %s2441_s20  ;;  %s2445_s21 = sphi %s2521_s21, %s16_s21   ;;  %s2441_s20 = sphi %s2519_s20, %s3981_s20   ;;  %s2437_s19 = sphi %s2517_s19, %s3980_s19   ;;  %s2433_s18 = sphi %s2515_s18, %s3979_s18   ;;  %s2429_s17 = sphi %s2513_s17, %s3978_s17  }
   0x6   : > { %p26_p0 = scmp.ge.s32.totalorder %s25_s22, 2  ;;  %s61_s23 = sadd.s32 1, %s2433_s18 }
   0x7   : > { %p68_p1 = scmp.ne.s32.totalorder %s2433_s18, %s2429_s17  ;;  %p69_p2 = scmp.eq.s32.totalorder %s2445_s21, 0 }
   0x8   : > { %s3983_s22 = smov (%p26_p0, %s25_s22), 0  ;;  %p142_p4 = scmp.eq.s32.totalorder %s2056_s3, 1 }
   0x9   : > { %p2546_p3 = por %p69_p2, %p68_p1  ;;  %s58_s25 = ssub.s32 %s2441_s20, %s3983_s22 }
   0xa   : > { %p2058_p5 = scmp.ge.s32.totalorder %s2445_s21, 1  ;;  %p59_p6 = scmp.eq.s32.totalorder %s58_s25, 0 }
   0xb   : > { %p2553_p7 = por %p142_p4, %p68_p1  ;;  %p155_p8 = scmp.lt.s32.totalorder %s2445_s21, 3 }
   0xc   : > { %s2559_s27 = scalar_select %p59_p6, %s2433_s18, %s61_s23  }
   0xd   : > { %s3907_s26 = scalar_select %p2553_p7, 1, 0 }
   0xe   : > { %p2561_p9 = pnand %p2058_p5, %p155_p8  ;;  %p2565_p10 = scmp.eq.s32.totalorder %s2056_s3, 0 }
   0xf   : > { %s177_s6 = sshll.u32 %s3882_s2, 4  ;;  %s178_s6 = int_to_ptr.vmem [resolvable:$true] %s177_s6 }
  0x10   : > { %p2119_p11 = pneg %p2561_p9  ;;  %s2384_s7 = scalar_lea.vmem %s178_s6, 16 }
  0x11   : > { %p2385_p13 = scmp.ne.s32.totalorder %s178_s6, %s2384_s7  ;;  %p2392_p4 = scmp.lt.s32.totalorder %s178_s6, %s178_s6 }
  0x12   : > { %p2120_p12 = pnand %p2565_p10, %p2119_p11  ;;  %p2393_p5 = scmp.lt.s32.totalorder %s2384_s7, %s2384_s7 }
  0x14   : > { %p2386_p0 = pneg %p2120_p12  ;;  %p2394_p6 = por %p2393_p5, %p2392_p4 }
  0x16   : > { %p2387_p1 = pnand %p2386_p0, %p2385_p13 }
  0x18   : > { %p2388_p2 = pneg %p2387_p1 }
  0x1a   : > { %p2395_p8 = pnand %p2394_p6, %p2388_p2 }
  0x1c   : > { %2398 = shalt.err (!%p2395_p8)
}
  0x1d   : > { %s2451_s8 = smov [#allocation4]   ;;  %p2061_p7 = scmp.ge.s32.totalorder %s2445_s21, 2 }
  0x1e   : > { %2122 = dma.vmem_to_smem (!%p2120_p12), %s178_s6, 16, %s2451_s8, [#allocation5]  }
  0x1f   : > { %187 = sbr.rel (%p2061_p7) target bundleno = 46 (0x2e), region = 28 }
  0x26   : > { %190 = sbr.rel (!%p2546_p3) target bundleno = 46 (0x2e), region = 32  ;;  %s192_s9 = sand.u32 (%p2546_p3), 1, %s2433_s18  }
  0x27   : > { %s2110_s10 = sshll.u32 (%p2546_p3), %s2441_s20, 4  ;;  %s2062_s11 = sshll.u32 (%p2546_p3), %s192_s9, 6 }
  0x28   : > { %s197_s14 = scalar_lea.vmem (%p2546_p3), %s3881_s1, %s2110_s10  ;;  %s194_s15 = scalar_lea.vmem (%p2546_p3), [#allocation3], %s2062_s11 }
  0x29   : > { %v210_v0 = vld [vmem:[%s197_s14] sm:$0xff] (%p2546_p3)  ;;  %v212_v1 = vld [vmem:[%s197_s14 + $0x8] sm:$0xff] (%p2546_p3) }
  0x2a   : > { %v214_v2 = vld [vmem:[%s197_s14 + $0x20] sm:$0xff] (%p2546_p3)  ;;  %211 = vst [vmem:[%s194_s15] sm:$0xff] (%p2546_p3), %v210_v0  ;;  %213 = vst [vmem:[%s194_s15 + $0x8] sm:$0xff] (%p2546_p3), %v212_v1  ;;  %v216_v3 = vld [vmem:[%s197_s14 + $0x28] sm:$0xff] (%p2546_p3) }
  0x2b   : > { %215 = vst [vmem:[%s194_s15 + $0x10] sm:$0xff] (%p2546_p3), %v214_v2  ;;  %v218_v4 = vld [vmem:[%s197_s14 + $0x40] sm:$0xff] (%p2546_p3)  ;;  %v220_v5 = vld [vmem:[%s197_s14 + $0x48] sm:$0xff] (%p2546_p3)  ;;  %217 = vst [vmem:[%s194_s15 + $0x18] sm:$0xff] (%p2546_p3), %v216_v3 }
  0x2c   : > { %219 = vst [vmem:[%s194_s15 + $0x20] sm:$0xff] (%p2546_p3), %v218_v4  ;;  %221 = vst [vmem:[%s194_s15 + $0x28] sm:$0xff] (%p2546_p3), %v220_v5  ;;  %v222_v6 = vld [vmem:[%s197_s14 + $0x60] sm:$0xff] (%p2546_p3)  ;;  %v224_v7 = vld [vmem:[%s197_s14 + $0x68] sm:$0xff] (%p2546_p3) }
  0x2d   : > { %223 = vst [vmem:[%s194_s15 + $0x30] sm:$0xff] %v222_v6  ;;  %225 = vst [vmem:[%s194_s15 + $0x38] sm:$0xff] %v224_v7 }
  0x2e PF: > { %234 = sbr.rel (%p2561_p9) target bundleno = 489 (0x1e9), region = 55 }
  0x35   : > { %s237_s16 = sand.u32 1, %s2429_s17  }
  0x36   : > { %s2066_s3 = sshll.u32 %s237_s16, 6 }
  0x37   : > { %s239_s23 = scalar_lea.vmem [#allocation3], %s2066_s3 }
  0x38   : > { %2424 = dma.done.wait (%p2565_p10), [#allocation5], 16  }
  0x39   : > { %2426 = vsyncadd (%p2565_p10), [#allocation5], 4294967280 }
  0x3a   : > { %247 = sfence }
  0x3b   : > { %s2068_s24 = sshll.u32 %s237_s16, 9  ;;  %v282_v8 = vld [vmem:[%s239_s23] sm:$0xff]  ;;  %v283_v9 = vld [vmem:[%s239_s23 + $0x8] sm:$0xff]  ;;  %v284_v10 = vld [vmem:[%s239_s23 + $0x10] sm:$0xff]  ;;  %s2591_s25 = sld [smem:[#allocation2]] }
  0x3c   : > { %v285_v11 = vld [vmem:[%s239_s23 + $0x18] sm:$0xff]  ;;  %v286_v12 = vld [vmem:[%s239_s23 + $0x20] sm:$0xff]  ;;  %v287_v13 = vld [vmem:[%s239_s23 + $0x28] sm:$0xff]  ;;  %v2593_v14 = vpack.c.bf16 %v284_v10, %v282_v8  ;;  %s2601_s17 = scalar_lea.vmem [#allocation6], %s2068_s24  ;;  %s2603_s28 = smov 0  }
  0x3d   : > { %v288_v15 = vld [vmem:[%s239_s23 + $0x30] sm:$0xff]  ;;  %v289_v16 = vld [vmem:[%s239_s23 + $0x38] sm:$0xff]  ;;  %v2595_v17 = vpack.c.bf16 %v285_v11, %v283_v9 }
  0x3e   : > { %3910 = vst [vmem:[#allocation8_spill] sm:$0xff] %v2593_v14  ;;  %v2597_v18 = vpack.c.bf16 %v288_v15, %v286_v12  ;;  %v2599_v19 = vpack.c.bf16 %v289_v16, %v287_v13 }
  0x3f   : > { %3911 = vst [vmem:[#allocation9_spill] sm:$0xff] %v2595_v17 }
  0x40   : > { %3912 = vst [vmem:[#allocation10_spill] sm:$0xff] %v2597_v18  ;;  %3913 = vst [vmem:[#allocation11_spill] sm:$0xff] %v2599_v19 }
  0x41 LB: >> { %v2452_v20 = vmov 2   ;;  %v2453_v21 = vmov 0   ;;  %s2069_s29 = sshll.u32 %s2449_s28, 4  ;;  %v2454_v25 = vmov 3   ;;  %v2455_v26 = vmov 1   ;;  %s2071_s7 = sld [smem:[#allocation4 + $0x2]]  ;;  %s2449_s28 = sphi %s2603_s28, %s300_s28  }
  0x42   : >> { %2209 = vset.pattern.permute.xlu1 %v2452_v20  ;;  %2207 = vset.pattern.permute.xlu0 %v2453_v21  ;;  %s302_s6 = scalar_lea.vmem %s3880_s0, %s2069_s29  ;;  %v2456_v27 = vmov 4   ;;  %v2457_v28 = vmov 5   ;;  %v2458_v29 = vmov 6   ;;  %v2459_v30 = vmov 8   ;;  %s2663_s8 = sld [smem:[#allocation4]] }
  0x43   : >> { %v303_v22 = vld [vmem:[%s302_s6] sm:$0xff]  ;;  %v304_v23 = vld [vmem:[%s302_s6 + $0x8] sm:$0xff]  ;;  %v2460_v31 = vmov 7   ;;  %v2461_v32 = vmov 11   ;;  %v2462_v33 = vmov 9   ;;  %v2463_v34 = vmov 14  }
  0x44   : >> { %v2614_v24 = vpack.c.bf16 %v304_v23, %v303_v22  ;;  %v2464_v35 = vmov 10   ;;  %v2465_v36 = vmov 17   ;;  %v2466_v37 = vmov 12   ;;  %s2670_s9 = sld [smem:[#allocation4 + $0x3]]  ;;  %s2672_s10 = sld [smem:[#allocation4 + $0x1]] }
  0x45   : >> { %v3917_v14 = vld [vmem:[#allocation8_spill] sm:$0xff]  ;;  %v2467_v38 = vmov 20   ;;  %v2468_v39 = vmov 13   ;;  %v2469_v40 = vmov 23   ;;  %v2470_v41 = vmov 15   ;;  %s2679_s11 = sld [smem:[#allocation4 + $0x4]] }
  0x46   : >> { %v3916_v17 = vld [vmem:[#allocation9_spill] sm:$0xff]  ;;  %400 = vperm.xlu1 %2209, %v2614_v24   ;;  %308 = vperm.xlu0 %2207, %v2614_v24   ;;  %v2471_v42 = vmov 26   ;;  %v2472_v43 = vmov 16   ;;  %v2473_v44 = vmov 29   ;;  %v2474_v45 = vmov 18   ;;  %s2681_s12 = sld [smem:[#allocation4 + $0x5]] }
  0x47   : >> { %v3914_v19 = vld [vmem:[#allocation11_spill] sm:$0xff]  ;;  %v3915_v18 = vld [vmem:[#allocation10_spill] sm:$0xff]  ;;  %v2475_v46 = vmov 31   ;;  %v2476_v47 = vmov 19   ;;  %v2477_v48 = vmov 21   ;;  %v2478_v49 = vmov 22  }
  0x48   : >> { %v2479_v50 = vmov 24   ;;  %v2480_v51 = vmov 25   ;;  %v2481_v52 = vmov 27   ;;  %v2482_v53 = vmov 28   ;;  %s2686_s13 = sld [smem:[#allocation4 + $0x6]]  ;;  %s2708_s14 = sld [smem:[#allocation4 + $0x7]] }
  0x49   : >> { %v2483_v54 = vmov 30   ;;  %v314_v55 = vlaneseq  ;;  %v357_v57 = vshrl.u32 %v3917_v14, 16  ;;  %v364_v58 = vshrl.u32 %v3916_v17, 16  ;;  %s2757_s15 = sld [smem:[#allocation4 + $0x8]]  ;;  %s2780_s16 = sld [smem:[#allocation4 + $0x9]] }
  0x4a   : >> { %2210 = vset.pattern.permute.xlu1 %v2454_v25  ;;  %2208 = vset.pattern.permute.xlu0 %v2455_v26  ;;  %v2654_v59 = vpack.i.b16 %v3917_v14, %v3917_v14  ;;  %v2658_v60 = vpack.i.b16 %v3916_v17, %v3916_v17  ;;  %v2692_v5 = vstv %s2071_s7  ;;  %s2784_s3 = sld [smem:[#allocation4 + $0xa]]  ;;  %s2792_s23 = sld [smem:[#allocation4 + $0xb]] }
  0x4b   : >> { %440 = vperm.xlu1 %2210, %v2614_v24   ;;  %354 = vperm.xlu0 %2208, %v2614_v24   ;;  %v2648_v56 = vshrl.u32 %v314_v55, 7  ;;  %v2668_v63 = vpack.i.b16 %v357_v57, %v357_v57  ;;  %v2674_v0 = vpack.i.b16 %v364_v58, %v364_v58  ;;  %s2794_s24 = sld [smem:[#allocation4 + $0xc]]  ;;  %s2799_s30 = sld [smem:[#allocation4 + $0xd]] }
  0x4c   : >> { %s2809_s5 = sld [smem:[#allocation4 + $0xe]]  ;;  %s2830_s6 = sld [smem:[#allocation4 + $0xf]] }
  0x4d   : >> { %v2661_v61 = vsub.s32 1, %v2648_v56  ;;  %v2666_v62 = vsub.s32 0, %v2648_v56  ;;  %v2677_v1 = vsub.s32 2, %v2648_v56  ;;  %v2684_v2 = vsub.s32 3, %v2648_v56  ;;  %s2844_s7 = sld [smem:[#allocation4 + $0x10]]  ;;  %s300_s28 = sadd.s32 1, %s2449_s28  }
  0x4e   : >> { %v2725_v26 = vsub.s32 4, %v2648_v56  ;;  %p297_p3 = scmp.ge.s32.totalorder %s300_s28, 32  }
  0x4f   : >> { %2211 = vset.pattern.permute.xlu1 %v2456_v27  ;;  %2212 = vset.pattern.permute.xlu0 %v2457_v28  ;;  %3918 = vst [vmem:[#allocation12_spill] sm:$0xff] %v2661_v61  ;;  %3919 = vst [vmem:[#allocation13_spill] sm:$0xff] %v2677_v1  ;;  %v406_v3 = vrot.slane %v2654_v59, %v2661_v61  ;;  %v410_v4 = vrot.slane %v2658_v60, %v2661_v61  ;;  %v2728_v27 = vstv %s2663_s8  ;;  %s2857_s8 = sld [smem:[#allocation4 + $0x11]]  ;;  %p3977_p7 = scmp.ne.s32.totalorder (%p297_p3), %s3907_s26, 0 }
  0x50   : >> { %480 = vperm.xlu1 %2211, %v2614_v24   ;;  %520 = vperm.xlu0 %2212, %v2614_v24   ;;  %v317_v6 = vrot.slane %v2654_v59, %v2666_v62  ;;  %v324_v7 = vrot.slane %v2658_v60, %v2666_v62  ;;  %v446_v8 = vrot.slane %v2668_v63, %v2661_v61 }
  0x51   : >> { %v450_v9 = vrot.slane %v2674_v0, %v2661_v61  ;;  %v363_v10 = vrot.slane %v2668_v63, %v2666_v62  ;;  %v370_v11 = vrot.slane %v2674_v0, %v2666_v62  ;;  %v486_v12 = vrot.slane %v2654_v59, %v2677_v1 }
  0x52   : >> { %v490_v16 = vrot.slane %v2658_v60, %v2677_v1  ;;  %v526_v20 = vrot.slane %v2668_v63, %v2677_v1  ;;  %v530_v21 = vrot.slane %v2674_v0, %v2677_v1 }
  0x54   : >> { %2213 = vset.pattern.permute.xlu1 %v2458_v29  ;;  %2215 = vset.pattern.permute.xlu0 %v2459_v30  ;;  %v2733_v29 = vstv %s2670_s9  ;;  %v2736_v30 = vstv %s2672_s10  ;;  %s2859_s9 = sld [smem:[#allocation4 + $0x12]]  ;;  %s2872_s10 = sld [smem:[#allocation4 + $0x13]] }
  0x55   : >> { %560 = vperm.xlu1 %2213, %v2614_v24   ;;  %640 = vperm.xlu0 %2215, %v2614_v24  }
  0x59   : >> { %2214 = vset.pattern.permute.xlu1 %v2460_v31  ;;  %2218 = vset.pattern.permute.xlu0 %v2461_v32 }
  0x5a   : >> { %600 = vperm.xlu1 %2214, %v2614_v24   ;;  %760 = vperm.xlu0 %2218, %v2614_v24   ;;  %v2936_v25 = vstv %s2872_s10 }
  0x5b   : >> { %3928 = vst [vmem:[#allocation22_spill] sm:$0xff] %v2936_v25 }
  0x5e   : >> { %2216 = vset.pattern.permute.xlu1 %v2462_v33  ;;  %2221 = vset.pattern.permute.xlu0 %v2463_v34  ;;  %v2745_v34 = vsub.s32 5, %v2648_v56 }
  0x5f   : >> { %680 = vperm.xlu1 %2216, %v2614_v24   ;;  %880 = vperm.xlu0 %2221, %v2614_v24  }
  0x63   : >> { %2217 = vset.pattern.permute.xlu1 %v2464_v35  ;;  %2224 = vset.pattern.permute.xlu0 %v2465_v36  ;;  %v2749_v36 = vstv %s2679_s11  ;;  %s2874_s11 = sld [smem:[#allocation4 + $0x14]] }
  0x64   : >> { %720 = vperm.xlu1 %2217, %v2614_v24   ;;  %1006 = vperm.xlu0 %2224, %v2614_v24  }
  0x68   : >> { %2219 = vset.pattern.permute.xlu1 %v2466_v37  ;;  %2227 = vset.pattern.permute.xlu0 %v2467_v38  ;;  %v2752_v37 = vstv %s2681_s12  ;;  %v2755_v38 = vstv %s2686_s13  ;;  %s3160_s12 = sld [smem:[#allocation4 + $0x15]]  ;;  %s3393_s13 = sld [smem:[#allocation4 + $0x17]] }
  0x69   : >> { %800 = vperm.xlu1 %2219, %v2614_v24   ;;  %1132 = vperm.xlu0 %2227, %v2614_v24  }
  0x6d   : >> { %2220 = vset.pattern.permute.xlu1 %v2468_v39  ;;  %2230 = vset.pattern.permute.xlu0 %v2469_v40 }
  0x6e   : >> { %840 = vperm.xlu1 %2220, %v2614_v24   ;;  %1252 = vperm.xlu0 %2230, %v2614_v24  }
  0x72   : >> { %2222 = vset.pattern.permute.xlu1 %v2470_v41  ;;  %2233 = vset.pattern.permute.xlu0 %v2471_v42  ;;  %v2930_v42 = vstv %s2859_s9 }
  0x73   : >> { %920 = vperm.xlu1 %2222, %v2614_v24   ;;  %1372 = vperm.xlu0 %2233, %v2614_v24   ;;  %3927 = vst [vmem:[#allocation21_spill] sm:$0xff] %v2930_v42 }
  0x77   : >> { %2223 = vset.pattern.permute.xlu1 %v2472_v43  ;;  %2236 = vset.pattern.permute.xlu0 %v2473_v44  ;;  %v2910_v44 = vstv %s2830_s6  ;;  %v2927_v43 = vstv %s2857_s8  ;;  %s3698_s6 = sld [smem:[#allocation4 + $0x1f]] }
  0x78   : >> { %960 = vperm.xlu1 %2223, %v2614_v24   ;;  %1492 = vperm.xlu0 %2236, %v2614_v24   ;;  %3924 = vst [vmem:[#allocation18_spill] sm:$0xff] %v2910_v44  ;;  %3926 = vst [vmem:[#allocation20_spill] sm:$0xff] %v2927_v43 }
  0x7c   : >> { %2225 = vset.pattern.permute.xlu1 %v2474_v45  ;;  %2239 = vset.pattern.permute.xlu0 %v2475_v46 }
  0x7d   : >> { %1052 = vperm.xlu1 %2225, %v2614_v24  }
  0x81   : >> { %2226 = vset.pattern.permute.xlu1 %v2476_v47 }
  0x82   : >> { %1092 = vperm.xlu1 %2226, %v2614_v24  }
  0x86   : >> { %2228 = vset.pattern.permute.xlu1 %v2477_v48  ;;  %v2772_v48 = vsub.s32 6, %v2648_v56 }
  0x87   : >> { %1172 = vperm.xlu1 %2228, %v2614_v24  }
  0x8b   : >> { %2229 = vset.pattern.permute.xlu1 %v2478_v49 }
  0x8c   : >> { %1212 = vperm.xlu1 %2229, %v2614_v24  }
  0x90   : >> { %2231 = vset.pattern.permute.xlu1 %v2479_v50 }
  0x91   : >> { %1292 = vperm.xlu1 %2231, %v2614_v24  }
  0x95   : >> { %2232 = vset.pattern.permute.xlu1 %v2480_v51  ;;  %v2778_v51 = vstv %s2708_s14  ;;  %s3484_s14 = sld [smem:[#allocation4 + $0x16]] }
  0x96   : >> { %1332 = vperm.xlu1 %2232, %v2614_v24  }
  0x9a   : >> { %2234 = vset.pattern.permute.xlu1 %v2481_v52 }
  0x9b   : >> { %1412 = vperm.xlu1 %2234, %v2614_v24  }
  0x9f   : >> { %2235 = vset.pattern.permute.xlu1 %v2482_v53 }
  0xa0   : >> { %1452 = vperm.xlu1 %2235, %v2614_v24  }
  0xa4   : >> { %2237 = vset.pattern.permute.xlu1 %v2483_v54  ;;  %v2884_v54 = vstv %s2809_s5  ;;  %s3668_s5 = sld [smem:[#allocation4 + $0x1e]] }
  0xa5   : >> { %1532 = vperm.xlu1 %2237, %v2614_v24   ;;  %3923 = vst [vmem:[#allocation17_spill] sm:$0xff] %v2884_v54 }
  0xa9   : >> { %2238 = vset.pattern.permute.xlu1 %v2475_v46 }
  0xaa   : >> { %1572 = vperm.xlu1 %2238, %v2614_v24  }
  0xc5   : >> { %v401_v13 = vpop.permute.xlu1 %400  ;;  %v309_v15 = vpop.permute.xlu0 %308 }
  0xc6   : >> { %v2718_v23 = vadd.bf16 %v406_v3, %v401_v13  ;;  %v2720_v24 = vadd.bf16 %v410_v4, %v401_v13  ;;  %v2730_v28 = vadd.bf16 %v317_v6, %v309_v15  ;;  %v2738_v31 = vadd.bf16 %v324_v7, %v309_v15 }
  0xc7   : >> { %v2802_v3 = vsub.s32 7, %v2648_v56  ;;  %v1016_v56 = vshrl.u32 %v3914_v19, 16  ;;  %v2868_v15 = vstv %s2794_s24  ;;  %s3643_s24 = sld [smem:[#allocation4 + $0x1b]] }
  0xc8   : >> { %v416_v35 = vmul.bf16 1069105081, %v2718_v23  ;;  %v419_v39 = vmul.bf16 1069105081, %v2720_v24  ;;  %v330_v45 = vmul.bf16 1069105081, %v2730_v28 }
  0xc9   : >> { %v333_v49 = vmul.bf16 1069105081, %v2738_v31  ;;  %3921 = vst [vmem:[#allocation15_spill] sm:$0xff] %v2868_v15  ;;  %vm413_vm0 = vcmp.gt.bf16.partialorder %v2718_v23, 0  ;;  %vm414_vm1 = vcmp.gt.bf16.partialorder %v2720_v24, 0  ;;  %vm327_vm2 = vcmp.gt.bf16.partialorder %v2730_v28, 0 }
  0xca   : >> { %v441_v40 = vpop.permute.xlu1 %440  ;;  %v355_v41 = vpop.permute.xlu0 %354  ;;  %2240 = vpow.bf16 %v416_v35  ;;  %vm328_vm3 = vcmp.gt.bf16.partialorder %v2738_v31, 0 }
  0xcb   : >> { %v2767_v46 = vadd.bf16 %v363_v10, %v355_v41  ;;  %v2775_v50 = vadd.bf16 %v370_v11, %v355_v41  ;;  %2242 = vpow.bf16 %v419_v39  ;;  %v2796_v57 = vadd.bf16 %v446_v8, %v441_v40 }
  0xcc   : >> { %2244 = vpow.bf16 %v330_v45  ;;  %v2804_v4 = vadd.bf16 %v450_v9, %v441_v40  ;;  %v1009_v11 = vshrl.u32 %v3915_v18, 16  ;;  %v2816_v9 = vstv %s2757_s15  ;;  %s3505_s15 = sld [smem:[#allocation4 + $0x1a]] }
  0xcd   : >> { %v376_v58 = vmul.bf16 1069105081, %v2767_v46  ;;  %v379_v6 = vmul.bf16 1069105081, %v2775_v50  ;;  %2246 = vpow.bf16 %v333_v49  ;;  %v456_v35 = vmul.bf16 1069105081, %v2796_v57 }
  0xce   : >> { %v459_v41 = vmul.bf16 1069105081, %v2804_v4  ;;  %v2853_v40 = vpack.i.b16 %v1009_v11, %v1009_v11  ;;  %v2865_v49 = vstv %s2792_s23  ;;  %vm453_vm4 = vcmp.gt.bf16.partialorder %v2796_v57, 0  ;;  %s3533_s23 = sld [smem:[#allocation4 + $0x1d]] }
  0xcf   : >> { %v481_v7 = vpop.permute.xlu1 %480  ;;  %2248 = vpow.bf16 %v376_v58  ;;  %v2847_v58 = vstv %s2780_s16  ;;  %v521_v55 = vpop.permute.xlu0 %520  ;;  %vm373_vm5 = vcmp.gt.bf16.partialorder %v2767_v46, 0  ;;  %vm374_vm6 = vcmp.gt.bf16.partialorder %v2775_v50, 0  ;;  %s3507_s16 = sld [smem:[#allocation4 + $0x18]] }
  0xd0   : >> { %2250 = vpow.bf16 %v379_v6  ;;  %v2826_v39 = vadd.bf16 %v486_v12, %v481_v7  ;;  %v2836_v45 = vadd.bf16 %v490_v16, %v481_v7  ;;  %v2842_v12 = vpack.i.b16 %v3915_v18, %v3915_v18 }
  0xd1   : >> { %v2851_v6 = vpack.i.b16 %v3914_v19, %v3914_v19  ;;  %v2855_v16 = vpack.i.b16 %v1016_v56, %v1016_v56  ;;  %v2862_v7 = vstv %s2784_s3  ;;  %2252 = vpow.bf16 %v456_v35  ;;  %s3524_s3 = sld [smem:[#allocation4 + $0x19]] }
  0xd2   : >> { %v496_v11 = vmul.bf16 1069105081, %v2826_v39  ;;  %v2878_v56 = vstv %s2799_s30  ;;  %2254 = vpow.bf16 %v459_v41  ;;  %v499_v10 = vmul.bf16 1069105081, %v2836_v45  ;;  %s3666_s30 = sld [smem:[#allocation4 + $0x1c]] }
  0xd3   : >> { %3920 = vst [vmem:[#allocation14_spill] sm:$0xff] %v2855_v16  ;;  %3922 = vst [vmem:[#allocation16_spill] sm:$0xff] %v2878_v56  ;;  %v2907_v8 = vadd.bf16 %v526_v20, %v521_v55  ;;  %v2915_v35 = vstv %s2844_s7  ;;  %v2924_v20 = vadd.bf16 %v530_v21, %v521_v55  ;;  %v3893_v21 = vmov 1065369472   ;;  %s1652_s7 = scalar_lea.vmem %s2601_s17, %s2069_s29 [#allocation6] }
  0xd4   : >> { %2256 = vpow.bf16 %v496_v11  ;;  %3925 = vst [vmem:[#allocation19_spill] sm:$0xff] %v2915_v35  ;;  %v561_v52 = vpop.permute.xlu1 %560  ;;  %v2939_v11 = vstv %s2874_s11  ;;  %v641_v19 = vpop.permute.xlu0 %640  ;;  %vm454_vm7 = vcmp.gt.bf16.partialorder %v2804_v4, 0  ;;  %vm493_vm8 = vcmp.gt.bf16.partialorder %v2826_v39, 0 }
  0xd5   : >> { %v2241_v53 = vpop.eup %2240  ;;  %2258 = vpow.bf16 %v499_v10  ;;  %3929 = vst [vmem:[#allocation23_spill] sm:$0xff] %v2939_v11  ;;  %v536_v10 = vmul.bf16 1069105081, %v2907_v8  ;;  %v539_v25 = vmul.bf16 1069105081, %v2924_v20  ;;  %vm494_vm9 = vcmp.gt.bf16.partialorder %v2836_v45, 0 }
  0xd6   : >> { %v2243_v47 = vpop.eup %2242  ;;  %v421_v55 = vsub.bf16 %v2241_v53, %v3893_v21  ;;  %v3930_v53 = vrot.slane %v2654_v59, %v2684_v2  ;;  %vm533_vm10 = vcmp.gt.bf16.partialorder %v2907_v8, 0  ;;  %vm534_vm11 = vcmp.gt.bf16.partialorder %v2924_v20, 0 }
  0xd7   : >> { %v2245_v33 = vpop.eup %2244  ;;  %v422_v14 = vsub.bf16 %v2243_v47, %v3893_v21  ;;  %2260 = vpow.bf16 %v536_v10  ;;  %v3933_v10 = vrot.slane %v2658_v60, %v2725_v26 }
  0xd8   : >> { %v2247_v41 = vpop.eup %2246  ;;  %v335_v17 = vsub.bf16 %v2245_v33, %v3893_v21  ;;  %v2957_v42 = vadd.bf16 %v3930_v53, %v561_v52  ;;  %v3931_v33 = vrot.slane %v2658_v60, %v2684_v2  ;;  %2262 = vpow.bf16 %v539_v25 }
  0xd9   : >> { %v336_v18 = vsub.bf16 %v2247_v41, %v3893_v21  ;;  %v3932_v41 = vrot.slane %v2654_v59, %v2725_v26 }
  0xda   : >> { %v2249_v32 = vpop.eup %2248  ;;  %vm573_vm12 = vcmp.gt.bf16.partialorder %v2957_v42, 0 }
  0xdb   : >> { %v2251_v13 = vpop.eup %2250  ;;  %v381_v22 = vsub.bf16 %v2249_v32, %v3893_v21  ;;  %v2965_v32 = vadd.bf16 %v3931_v33, %v561_v52  ;;  %v2974_v53 = vadd.bf16 %v3932_v41, %v641_v19  ;;  %v337_v52 = vsel %vm327_vm2, %v2730_v28, %v335_v17 }
  0xdc   : >> { %v382_v11 = vsub.bf16 %v2251_v13, %v3893_v21  ;;  %v2253_v43 = vpop.eup %2252  ;;  %v423_v13 = vsel %vm413_vm0, %v2718_v23, %v421_v55  ;;  %v424_v21 = vsel %vm414_vm1, %v2720_v24, %v422_v14  ;;  %v338_v23 = vsel %vm328_vm3, %v2738_v31, %v336_v18 }
  0xdd   : >> { %v2255_v47 = vpop.eup %2254  ;;  %v2989_v55 = vadd.bf16 %v3933_v10, %v641_v19  ;;  %v383_v33 = vsel %vm373_vm5, %v2767_v46, %v381_v22  ;;  %v576_v14 = vmul.bf16 1069105081, %v2957_v42  ;;  %v426_v24 = vunpack.c.l.bf16 %v423_v13 }
  0xde   : >> { %v384_v41 = vsel %vm374_vm6, %v2775_v50, %v382_v11  ;;  %v3934_v28 = vmov 1065369472   ;;  %v579_v35 = vmul.bf16 1069105081, %v2965_v32  ;;  %v427_v19 = vunpack.c.l.bf16 %v424_v21 }
  0xdf   : >> { %v2257_v17 = vpop.eup %2256  ;;  %v461_v18 = vsub.bf16 %v2253_v43, %v3934_v28  ;;  %v462_v31 = vsub.bf16 %v2255_v47, %v3934_v28  ;;  %v428_v10 = vunpack.c.h.bf16 %v423_v13  ;;  %v340_v54 = vunpack.c.l.bf16 %v337_v52 }
  0xe0   : >> { %v2259_v44 = vpop.eup %2258  ;;  %v341_v22 = vunpack.c.l.bf16 %v338_v23  ;;  %v342_v46 = vunpack.c.h.bf16 %v337_v52  ;;  %v343_v50 = vunpack.c.h.bf16 %v338_v23  ;;  %v386_v11 = vunpack.c.l.bf16 %v383_v33  ;;  %v601_v52 = vpop.permute.xlu1 %600 }
  0xe1   : >> { %v387_v1 = vunpack.c.l.bf16 %v384_v41  ;;  %v429_v25 = vunpack.c.h.bf16 %v424_v21  ;;  %v388_v56 = vunpack.c.h.bf16 %v383_v33  ;;  %v501_v61 = vsub.bf16 %v2257_v17, %v3934_v28 }
  0xe2   : >> { %2264 = vpow.bf16 %v576_v14  ;;  %v463_v43 = vsel %vm453_vm4, %v2796_v57, %v461_v18  ;;  %v464_v47 = vsel %vm454_vm7, %v2804_v4, %v462_v31  ;;  %v389_v13 = vunpack.c.h.bf16 %v384_v41 }
  0xe3   : >> { %v502_v15 = vsub.bf16 %v2259_v44, %v3934_v28  ;;  %v431_v23 = vmul.f32 %v2692_v5, %v426_v24  ;;  %v345_v21 = vmul.f32 %v2728_v27, %v340_v54  ;;  %v346_v33 = vmul.f32 %v2728_v27, %v341_v22 }
  0xe4   : >> { %2266 = vpow.bf16 %v579_v35  ;;  %v347_v14 = vmul.f32 %v2728_v27, %v342_v46  ;;  %v348_v17 = vmul.f32 %v2728_v27, %v343_v50  ;;  %v391_v57 = vmul.f32 %v2736_v30, %v386_v11  ;;  %v2261_v35 = vpop.eup %2260 }
  0xe5   : >> { %v392_v18 = vmul.f32 %v2736_v30, %v387_v1  ;;  %v466_v4 = vunpack.c.l.bf16 %v463_v43  ;;  %v467_v44 = vunpack.c.l.bf16 %v464_v47  ;;  %v393_v41 = vmul.f32 %v2736_v30, %v388_v56  ;;  %v2263_v50 = vpop.eup %2262 }
  0xe6   : >> { %v503_v54 = vsel %vm493_vm8, %v2826_v39, %v501_v61  ;;  %v468_v24 = vunpack.c.h.bf16 %v463_v43  ;;  %v469_v31 = vunpack.c.h.bf16 %v464_v47  ;;  %v394_v27 = vmul.f32 %v2736_v30, %v389_v13 }
  0xe7   : >> { %v504_v1 = vsel %vm494_vm9, %v2836_v45, %v502_v15  ;;  %v432_v22 = vmul.f32 %v2692_v5, %v427_v19  ;;  %v433_v46 = vmul.f32 %v2692_v5, %v428_v10  ;;  %v434_v56 = vmul.f32 %v2692_v5, %v429_v25  ;;  %v681_v15 = vpop.permute.xlu1 %680 }
  0xe8   : >> { %v3935_v61 = vrot.slane %v2668_v63, %v2684_v2  ;;  %v395_v11 = vadd.f32 %v391_v57, %v345_v21  ;;  %v396_v43 = vadd.f32 %v392_v18, %v346_v33  ;;  %v506_v47 = vunpack.c.l.bf16 %v503_v54 }
  0xe9   : >> { %v3936_v30 = vrot.slane %v2674_v0, %v2684_v2  ;;  %v471_v45 = vmul.f32 %v2733_v29, %v466_v4  ;;  %v472_v19 = vmul.f32 %v2733_v29, %v467_v44  ;;  %v397_v5 = vadd.f32 %v393_v41, %v347_v14 }
  0xea   : >> { %v3029_v39 = vadd.bf16 %v3935_v61, %v601_v52  ;;  %v507_v10 = vunpack.c.l.bf16 %v504_v1  ;;  %v473_v25 = vmul.f32 %v2733_v29, %v468_v24  ;;  %v474_v61 = vmul.f32 %v2733_v29, %v469_v31 }
  0xeb   : >> { %v3034_v13 = vadd.bf16 %v3936_v30, %v601_v52  ;;  %v398_v16 = vadd.f32 %v394_v27, %v348_v17  ;;  %v508_v21 = vunpack.c.h.bf16 %v503_v54  ;;  %v509_v33 = vunpack.c.h.bf16 %v504_v1  ;;  %v721_v1 = vpop.permute.xlu1 %720 }
  0xec   : >> { %v541_v57 = vsub.bf16 %v2261_v35, %v3934_v28  ;;  %v616_v52 = vmul.bf16 1069105081, %v3029_v39  ;;  %v435_v30 = vadd.f32 %v431_v23, %v395_v11  ;;  %v436_v44 = vadd.f32 %v432_v22, %v396_v43 }
  0xed   : >> { %v619_v18 = vmul.bf16 1069105081, %v3034_v13  ;;  %v2265_v4 = vpop.eup %2264  ;;  %v511_v14 = vmul.f32 %v2749_v36, %v506_v47  ;;  %v542_v41 = vsub.bf16 %v2263_v50, %v3934_v28  ;;  %v437_v24 = vadd.f32 %v433_v46, %v397_v5 }
  0xee   : >> { %v512_v29 = vmul.f32 %v2749_v36, %v507_v10  ;;  %2268 = vpow.bf16 %v616_v52  ;;  %v656_v17 = vmul.bf16 1069105081, %v2974_v53  ;;  %v438_v31 = vadd.f32 %v434_v56, %v398_v16 }
  0xef   : >> { %v2267_v54 = vpop.eup %2266  ;;  %v513_v35 = vmul.f32 %v2749_v36, %v508_v21  ;;  %2270 = vpow.bf16 %v619_v18  ;;  %v659_v27 = vmul.bf16 1069105081, %v2989_v55  ;;  %v514_v23 = vmul.f32 %v2749_v36, %v509_v33 }
  0xf0   : >> { %v543_v22 = vsel %vm533_vm10, %v2907_v8, %v541_v57  ;;  %v581_v46 = vsub.bf16 %v2265_v4, %v3934_v28  ;;  %v3937_v50 = vrot.slane %v2668_v63, %v2725_v26  ;;  %v475_v16 = vadd.f32 %v471_v45, %v435_v30 }
  0xf1   : >> { %v476_v56 = vadd.f32 %v472_v19, %v436_v44  ;;  %v544_v43 = vsel %vm534_vm11, %v2924_v20, %v542_v41  ;;  %v3938_v36 = vrot.slane %v2674_v0, %v2725_v26  ;;  %v477_v5 = vadd.f32 %v473_v25, %v437_v24 }
  0xf2   : >> { %v3058_v11 = vadd.bf16 %v3937_v50, %v681_v15  ;;  %v582_v8 = vsub.bf16 %v2267_v54, %v3934_v28  ;;  %2272 = vpow.bf16 %v656_v17  ;;  %v3939_v10 = vrot.slane %v2654_v59, %v2745_v34 }
  0xf3   : >> { %v3066_v47 = vadd.bf16 %v3938_v36, %v681_v15  ;;  %v478_v45 = vadd.f32 %v474_v61, %v438_v31  ;;  %v546_v19 = vunpack.c.l.bf16 %v543_v22  ;;  %2274 = vpow.bf16 %v659_v27  ;;  %v761_v31 = vpop.permute.xlu0 %760 }
  0xf4   : >> { %v3072_v21 = vadd.bf16 %v3939_v10, %v721_v1  ;;  %v696_v33 = vmul.bf16 1069105081, %v3058_v11  ;;  %v547_v20 = vunpack.c.l.bf16 %v544_v43  ;;  %v548_v57 = vunpack.c.h.bf16 %v543_v22 }
  0xf5   : >> { %v583_v15 = vsel %vm573_vm12, %v2957_v42, %v581_v46  ;;  %v699_v25 = vmul.bf16 1069105081, %v3066_v47  ;;  %v549_v52 = vunpack.c.h.bf16 %v544_v43  ;;  %vm574_vm13 = vcmp.gt.bf16.partialorder %v2965_v32, 0  ;;  %v801_v46 = vpop.permute.xlu1 %800 }
  0xf6   : >> { %v3940_v18 = vrot.slane %v2658_v60, %v2745_v34  ;;  %v1218_v61 = vrot.slane %v2842_v12, %v2684_v2  ;;  %v515_v30 = vadd.f32 %v511_v14, %v475_v16  ;;  %v516_v44 = vadd.f32 %v512_v29, %v476_v56 }
  0xf7   : >> { %v584_v41 = vsel %vm574_vm13, %v2965_v32, %v582_v8  ;;  %v736_v24 = vmul.bf16 1069105081, %v3072_v21  ;;  %v517_v42 = vadd.f32 %v513_v35, %v477_v5  ;;  %v551_v17 = vmul.f32 %v2752_v37, %v546_v19 }
  0xf8   : >> { %v3083_v4 = vadd.bf16 %v3940_v18, %v721_v1  ;;  %v586_v54 = vunpack.c.l.bf16 %v583_v15  ;;  %2276 = vpow.bf16 %v696_v33  ;;  %v518_v27 = vadd.f32 %v514_v23, %v478_v45 }
  0xf9   : >> { %v552_v22 = vmul.f32 %v2752_v37, %v547_v20  ;;  %v553_v1 = vmul.f32 %v2752_v37, %v548_v57  ;;  %2278 = vpow.bf16 %v699_v25  ;;  %v2269_v50 = vpop.eup %2268  ;;  %v554_v14 = vmul.f32 %v2752_v37, %v549_v52 }
  0xfa   : >> { %v587_v29 = vunpack.c.l.bf16 %v584_v41  ;;  %v588_v32 = vunpack.c.h.bf16 %v583_v15  ;;  %v739_v16 = vmul.bf16 1069105081, %v3083_v4  ;;  %v2271_v35 = vpop.eup %2270  ;;  %vm613_vm14 = vcmp.gt.bf16.partialorder %v3029_v39, 0 }
  0xfb   : >> { %2280 = vpow.bf16 %v736_v24  ;;  %v3941_v23 = vrot.slane %v2668_v63, %v2745_v34  ;;  %v1222_v43 = vrot.slane %v2851_v6, %v2684_v2  ;;  %v555_v36 = vadd.f32 %v551_v17, %v515_v30 }
  0xfc   : >> { %v589_v5 = vunpack.c.h.bf16 %v584_v41  ;;  %v591_v37 = vmul.f32 %v2755_v38, %v586_v54  ;;  %v621_v8 = vsub.bf16 %v2269_v50, %v3934_v28  ;;  %v556_v10 = vadd.f32 %v552_v22, %v516_v44  ;;  %v841_v44 = vpop.permute.xlu1 %840 }
  0xfd   : >> { %v3098_v56 = vadd.bf16 %v3941_v23, %v761_v31  ;;  %v557_v45 = vadd.f32 %v553_v1, %v517_v42  ;;  %v622_v19 = vsub.bf16 %v2271_v35, %v3934_v28  ;;  %v3942_v33 = vrot.slane %v2674_v0, %v2745_v34  ;;  %v2273_v57 = vpop.eup %2272 }
  0xfe   : >> { %v558_v15 = vadd.f32 %v554_v14, %v518_v27  ;;  %v592_v25 = vmul.f32 %v2755_v38, %v587_v29  ;;  %v593_v52 = vmul.f32 %v2755_v38, %v588_v32  ;;  %2282 = vpow.bf16 %v739_v16  ;;  %v2275_v18 = vpop.eup %2274 }
  0xff   : >> { %v3108_v20 = vadd.bf16 %v3942_v33, %v761_v31  ;;  %vm614_vm15 = vcmp.gt.bf16.partialorder %v3034_v13, 0  ;;  %vm653_vm0 = vcmp.gt.bf16.partialorder %v2974_v53, 0  ;;  %vm654_vm1 = vcmp.gt.bf16.partialorder %v2989_v55, 0 }
 0x100   : >> { %v776_v30 = vmul.bf16 1069105081, %v3098_v56  ;;  %v594_v41 = vmul.f32 %v2755_v38, %v589_v5  ;;  %v595_v24 = vadd.f32 %v591_v37, %v555_v36  ;;  %v623_v42 = vsel %vm613_vm14, %v3029_v39, %v621_v8 }
 0x101   : >> { %v3943_v17 = vrot.slane %v2654_v59, %v2772_v48  ;;  %v624_v31 = vsel %vm614_vm15, %v3034_v13, %v622_v19  ;;  %v661_v27 = vsub.bf16 %v2273_v57, %v3934_v28  ;;  %v779_v22 = vmul.bf16 1069105081, %v3108_v20 }
 0x102   : >> { %v3944_v1 = vrot.slane %v2658_v60, %v2772_v48  ;;  %v596_v50 = vadd.f32 %v592_v25, %v556_v10  ;;  %v597_v14 = vadd.f32 %v593_v52, %v557_v45  ;;  %v662_v39 = vsub.bf16 %v2275_v18, %v3934_v28 }
 0x103   : >> { %v3123_v54 = vadd.bf16 %v3943_v17, %v801_v46  ;;  %v3945_v29 = vrot.slane %v2668_v63, %v2772_v48  ;;  %v2277_v16 = vpop.eup %2276  ;;  %v626_v13 = vunpack.c.l.bf16 %v623_v42  ;;  %v628_v35 = vunpack.c.h.bf16 %v623_v42 }
 0x104   : >> { %v3131_v38 = vadd.bf16 %v3944_v1, %v801_v46  ;;  %2284 = vpow.bf16 %v776_v30  ;;  %v3946_v23 = vrot.slane %v2674_v0, %v2772_v48  ;;  %v2279_v46 = vpop.eup %2278  ;;  %v598_v5 = vadd.f32 %v594_v41, %v558_v15 }
 0x105   : >> { %v3137_v32 = vadd.bf16 %v3945_v29, %v841_v44  ;;  %v627_v37 = vunpack.c.l.bf16 %v624_v31  ;;  %v629_v8 = vunpack.c.h.bf16 %v624_v31  ;;  %v816_v10 = vmul.bf16 1069105081, %v3123_v54 }
 0x106   : >> { %v3142_v36 = vadd.bf16 %v3946_v23, %v841_v44  ;;  %v663_v45 = vsel %vm653_vm0, %v2974_v53, %v661_v27  ;;  %vm693_vm2 = vcmp.gt.bf16.partialorder %v3058_v11, 0  ;;  %2286 = vpow.bf16 %v779_v22  ;;  %v2281_v33 = vpop.eup %2280 }
 0x107   : >> { %v819_v19 = vmul.bf16 1069105081, %v3131_v38  ;;  %v664_v57 = vsel %vm654_vm1, %v2989_v55, %v662_v39  ;;  %vm694_vm3 = vcmp.gt.bf16.partialorder %v3066_v47, 0  ;;  %v701_v15 = vsub.bf16 %v2277_v16, %v3934_v28 }
 0x108   : >> { %v856_v25 = vmul.bf16 1069105081, %v3137_v32  ;;  %v631_v52 = vmul.f32 %v2778_v51, %v626_v13  ;;  %v633_v53 = vmul.f32 %v2778_v51, %v628_v35  ;;  %v702_v18 = vsub.bf16 %v2279_v46, %v3934_v28 }
 0x109   : >> { %v859_v30 = vmul.bf16 1069105081, %v3142_v36  ;;  %v632_v44 = vmul.f32 %v2778_v51, %v627_v37  ;;  %v634_v55 = vmul.f32 %v2778_v51, %v629_v8  ;;  %v666_v41 = vunpack.c.l.bf16 %v663_v45  ;;  %v2283_v42 = vpop.eup %2282 }
 0x10a   : >> { %2288 = vpow.bf16 %v816_v10  ;;  %v667_v17 = vunpack.c.l.bf16 %v664_v57  ;;  %v668_v31 = vunpack.c.h.bf16 %v663_v45  ;;  %v741_v27 = vsub.bf16 %v2281_v33, %v3934_v28 }
 0x10b   : >> { %2290 = vpow.bf16 %v819_v19  ;;  %v669_v22 = vunpack.c.h.bf16 %v664_v57  ;;  %v703_v1 = vsel %vm693_vm2, %v3058_v11, %v701_v15  ;;  %vm733_vm4 = vcmp.gt.bf16.partialorder %v3072_v21, 0 }
 0x10c   : >> { %2292 = vpow.bf16 %v856_v25  ;;  %v635_v39 = vadd.f32 %v631_v52, %v595_v24  ;;  %v637_v29 = vadd.f32 %v633_v53, %v597_v14  ;;  %v704_v51 = vsel %vm694_vm3, %v3066_v47, %v702_v18  ;;  %v881_v14 = vpop.permute.xlu0 %880 }
 0x10d   : >> { %2294 = vpow.bf16 %v859_v30  ;;  %v636_v16 = vadd.f32 %v632_v44, %v596_v50  ;;  %v638_v13 = vadd.f32 %v634_v55, %v598_v5  ;;  %v671_v35 = vmul.f32 %v2816_v9, %v666_v41  ;;  %v921_v44 = vpop.permute.xlu1 %920 }
 0x10e   : >> { %v742_v23 = vsub.bf16 %v2283_v42, %v3934_v28  ;;  %v672_v46 = vmul.f32 %v2816_v9, %v667_v17  ;;  %v673_v11 = vmul.f32 %v2816_v9, %v668_v31  ;;  %v706_v37 = vunpack.c.l.bf16 %v703_v1 }
 0x10f   : >> { %v743_v24 = vsel %vm733_vm4, %v3072_v21, %v741_v27  ;;  %v2285_v8 = vpop.eup %2284  ;;  %v674_v10 = vmul.f32 %v2816_v9, %v669_v22  ;;  %v707_v47 = vunpack.c.l.bf16 %v704_v51  ;;  %v708_v45 = vunpack.c.h.bf16 %v703_v1 }
 0x110   : >> { %v709_v50 = vunpack.c.h.bf16 %v704_v51  ;;  %vm734_vm5 = vcmp.gt.bf16.partialorder %v3083_v4, 0  ;;  %vm773_vm6 = vcmp.gt.bf16.partialorder %v3098_v56, 0  ;;  %v3181_v5 = vstv %s3160_s12 }
 0x111   : >> { %v1378_v19 = vrot.slane %v2842_v12, %v2745_v34  ;;  %v2287_v33 = vpop.eup %2286  ;;  %v675_v57 = vadd.f32 %v671_v35, %v635_v39  ;;  %v744_v21 = vsel %vm734_vm5, %v3083_v4, %v742_v23  ;;  %v746_v15 = vunpack.c.l.bf16 %v743_v24 }
 0x112   : >> { %v3947_v9 = vrot.slane %v2654_v59, %v2802_v3  ;;  %v676_v52 = vadd.f32 %v672_v46, %v636_v16  ;;  %v677_v53 = vadd.f32 %v673_v11, %v637_v29  ;;  %v711_v18 = vmul.f32 %v2847_v58, %v706_v37 }
 0x113   : >> { %v781_v30 = vsub.bf16 %v2285_v8, %v3934_v28  ;;  %v678_v55 = vadd.f32 %v674_v10, %v638_v13  ;;  %v712_v41 = vmul.f32 %v2847_v58, %v707_v47  ;;  %v713_v42 = vmul.f32 %v2847_v58, %v708_v45  ;;  %v961_v10 = vpop.permute.xlu1 %960 }
 0x114   : >> { %v3189_v25 = vadd.bf16 %v3947_v9, %v881_v14  ;;  %v714_v4 = vmul.f32 %v2847_v58, %v709_v50  ;;  %v747_v31 = vunpack.c.l.bf16 %v744_v21  ;;  %v748_v27 = vunpack.c.h.bf16 %v743_v24 }
 0x115   : >> { %v2289_v17 = vpop.eup %2288  ;;  %v749_v59 = vunpack.c.h.bf16 %v744_v21  ;;  %v782_v22 = vsub.bf16 %v2287_v33, %v3934_v28  ;;  %v751_v39 = vmul.f32 %v2862_v7, %v746_v15  ;;  %vm774_vm7 = vcmp.gt.bf16.partialorder %v3108_v20, 0 }
 0x116   : >> { %v2291_v1 = vpop.eup %2290  ;;  %vm813_vm8 = vcmp.gt.bf16.partialorder %v3123_v54, 0  ;;  %v3948_v29 = vrot.slane %v2658_v60, %v2802_v3  ;;  %v715_v58 = vadd.f32 %v711_v18, %v675_v57  ;;  %v783_v13 = vsel %vm773_vm6, %v3098_v56, %v781_v30 }
 0x117   : >> { %v2293_v16 = vpop.eup %2292  ;;  %vm814_vm9 = vcmp.gt.bf16.partialorder %v3131_v38, 0  ;;  %v896_v35 = vmul.bf16 1069105081, %v3189_v25  ;;  %v716_v46 = vadd.f32 %v712_v41, %v676_v52  ;;  %v717_v11 = vadd.f32 %v713_v42, %v677_v53 }
 0x118   : >> { %v3203_v51 = vadd.bf16 %v3948_v29, %v881_v14  ;;  %v2295_v23 = vpop.eup %2294  ;;  %v718_v37 = vadd.f32 %v714_v4, %v678_v55  ;;  %v821_v24 = vsub.bf16 %v2289_v17, %v3934_v28  ;;  %vm853_vm10 = vcmp.gt.bf16.partialorder %v3137_v32, 0  ;;  %v1007_v17 = vpop.permute.xlu0 %1006 }
 0x119   : >> { %vm854_vm11 = vcmp.gt.bf16.partialorder %v3142_v36, 0  ;;  %v752_v60 = vmul.f32 %v2862_v7, %v747_v31  ;;  %v753_v14 = vmul.f32 %v2862_v7, %v748_v27  ;;  %v754_v56 = vmul.f32 %v2862_v7, %v749_v59 }
 0x11a   : >> { %v784_v8 = vsel %vm774_vm7, %v3108_v20, %v782_v22  ;;  %v755_v47 = vadd.f32 %v751_v39, %v715_v58  ;;  %v786_v45 = vunpack.c.l.bf16 %v783_v13  ;;  %v788_v50 = vunpack.c.h.bf16 %v783_v13 }
 0x11b   : >> { %v899_v33 = vmul.bf16 1069105081, %v3203_v51  ;;  %v822_v57 = vsub.bf16 %v2291_v1, %v3934_v28  ;;  %2296 = vpow.bf16 %v896_v35  ;;  %v3949_v21 = vrot.slane %v2668_v63, %v2802_v3 }
 0x11c   : >> { %v3950_v7 = vrot.slane %v2674_v0, %v2802_v3  ;;  %v823_v20 = vsel %vm813_vm8, %v3123_v54, %v821_v24  ;;  %v3951_v52 = vrot.slane %v2842_v12, %v2666_v62  ;;  %v3952_v63 = vrot.slane %v2851_v6, %v2666_v62 }
 0x11d   : >> { %v3224_v15 = vadd.bf16 %v3949_v21, %v921_v44  ;;  %2298 = vpow.bf16 %v899_v33  ;;  %v861_v30 = vsub.bf16 %v2293_v16, %v3934_v28  ;;  %v862_v0 = vsub.bf16 %v2295_v23, %v3934_v28  ;;  %v1053_v16 = vpop.permute.xlu1 %1052 }
 0x11e   : >> { %v3229_v9 = vadd.bf16 %v3950_v7, %v921_v44  ;;  %v3237_v53 = vadd.bf16 %v3951_v52, %v961_v10  ;;  %v3242_v18 = vadd.bf16 %v3952_v63, %v961_v10  ;;  %v756_v54 = vadd.f32 %v752_v60, %v716_v46 }
 0x11f   : >> { %v936_v44 = vmul.bf16 1069105081, %v3224_v15  ;;  %v787_v41 = vunpack.c.l.bf16 %v784_v8  ;;  %v789_v42 = vunpack.c.h.bf16 %v784_v8  ;;  %v791_v4 = vmul.f32 %v2865_v49, %v786_v45 }
 0x120   : >> { %v939_v55 = vmul.bf16 1069105081, %v3229_v9  ;;  %v757_v31 = vadd.f32 %v753_v14, %v717_v11  ;;  %v758_v27 = vadd.f32 %v754_v56, %v718_v37  ;;  %v793_v59 = vmul.f32 %v2865_v49, %v788_v50  ;;  %v3954_v37 = vld [vmem:[#allocation14_spill] sm:$0xff] }
 0x121   : >> { %v982_v22 = vmul.bf16 1069105081, %v3237_v53  ;;  %v824_v1 = vsel %vm814_vm9, %v3131_v38, %v822_v57  ;;  %v826_v39 = vunpack.c.l.bf16 %v823_v20  ;;  %2300 = vpow.bf16 %v936_v44 }
 0x122   : >> { %v985_v29 = vmul.bf16 1069105081, %v3242_v18  ;;  %v863_v58 = vsel %vm853_vm10, %v3137_v32, %v861_v30  ;;  %v864_v13 = vsel %vm854_vm11, %v3142_v36, %v862_v0  ;;  %2302 = vpow.bf16 %v939_v55  ;;  %v3956_v36 = vld [vmem:[#allocation15_spill] sm:$0xff]  ;;  %v1093_v30 = vpop.permute.xlu1 %1092 }
 0x123   : >> { %v3953_v35 = vrot.slane %v2853_v40, %v2666_v62  ;;  %v792_v38 = vmul.f32 %v2865_v49, %v787_v41  ;;  %v794_v46 = vmul.f32 %v2865_v49, %v789_v42  ;;  %v795_v11 = vadd.f32 %v791_v4, %v755_v47 }
 0x124   : >> { %v3955_v24 = vrot.slane %v3954_v37, %v2666_v62  ;;  %v827_v32 = vunpack.c.l.bf16 %v824_v1  ;;  %v828_v14 = vunpack.c.h.bf16 %v823_v20  ;;  %v829_v56 = vunpack.c.h.bf16 %v824_v1  ;;  %v3957_v20 = vld [vmem:[#allocation12_spill] sm:$0xff] }
 0x125   : >> { %v3264_v23 = vadd.bf16 %v3953_v35, %v1007_v17  ;;  %vm893_vm12 = vcmp.gt.bf16.partialorder %v3189_v25, 0  ;;  %2304 = vpow.bf16 %v982_v22  ;;  %v831_v8 = vmul.f32 %v3956_v36, %v826_v39 }
 0x126   : >> { %v3271_v60 = vadd.bf16 %v3955_v24, %v1007_v17  ;;  %v866_v10 = vunpack.c.l.bf16 %v863_v58  ;;  %v867_v45 = vunpack.c.l.bf16 %v864_v13  ;;  %2306 = vpow.bf16 %v985_v29  ;;  %v2297_v57 = vpop.eup %2296  ;;  %v3960_v17 = vld [vmem:[#allocation16_spill] sm:$0xff] }
 0x127   : >> { %v797_v50 = vadd.f32 %v793_v59, %v757_v31  ;;  %v868_v33 = vunpack.c.h.bf16 %v863_v58  ;;  %v869_v49 = vunpack.c.h.bf16 %v864_v13  ;;  %v1028_v47 = vmul.bf16 1069105081, %v3264_v23 }
 0x128   : >> { %v796_v62 = vadd.f32 %v792_v38, %v756_v54  ;;  %v798_v21 = vadd.f32 %v794_v46, %v758_v27  ;;  %v1031_v7 = vmul.bf16 1069105081, %v3271_v60  ;;  %v3958_v52 = vrot.slane %v2842_v12, %v3957_v20  ;;  %v2299_v0 = vpop.eup %2298 }
 0x129   : >> { %v832_v44 = vmul.f32 %v3956_v36, %v827_v32  ;;  %v833_v55 = vmul.f32 %v3956_v36, %v828_v14  ;;  %v834_v41 = vmul.f32 %v3956_v36, %v829_v56  ;;  %v3959_v42 = vrot.slane %v2851_v6, %v3957_v20  ;;  %v1133_v56 = vpop.permute.xlu0 %1132 }
 0x12a   : >> { %v3280_v63 = vadd.bf16 %v3958_v52, %v1053_v16  ;;  %v835_v4 = vadd.f32 %v831_v8, %v795_v11  ;;  %v871_v31 = vmul.f32 %v3960_v17, %v866_v10  ;;  %v872_v27 = vmul.f32 %v3960_v17, %v867_v45 }
 0x12b   : >> { %v3288_v54 = vadd.bf16 %v3959_v42, %v1053_v16  ;;  %vm894_vm13 = vcmp.gt.bf16.partialorder %v3203_v51, 0  ;;  %v873_v59 = vmul.f32 %v3960_v17, %v868_v33  ;;  %v874_v22 = vmul.f32 %v3960_v17, %v869_v49 }
 0x12c   : >> { %2308 = vpow.bf16 %v1028_v47  ;;  %v3961_v1 = vrot.slane %v2853_v40, %v3957_v20  ;;  %v901_v29 = vsub.bf16 %v2297_v57, %v3934_v28  ;;  %v902_v16 = vsub.bf16 %v2299_v0, %v3934_v28  ;;  %v2301_v13 = vpop.eup %2300 }
 0x12d   : >> { %2310 = vpow.bf16 %v1031_v7  ;;  %v1068_v58 = vmul.bf16 1069105081, %v3280_v63  ;;  %v836_v35 = vadd.f32 %v832_v44, %v796_v62  ;;  %v837_v38 = vadd.f32 %v833_v55, %v797_v50  ;;  %v2303_v24 = vpop.eup %2302  ;;  %v1173_v55 = vpop.permute.xlu1 %1172 }
 0x12e   : >> { %v3298_v39 = vadd.bf16 %v3961_v1, %v1093_v30  ;;  %v838_v46 = vadd.f32 %v834_v41, %v798_v21  ;;  %v1071_v11 = vmul.bf16 1069105081, %v3288_v54  ;;  %v3962_v32 = vrot.slane %v3954_v37, %v3957_v20 }
 0x12f   : >> { %v1382_v36 = vrot.slane %v2851_v6, %v2745_v34  ;;  %v1298_v8 = vrot.slane %v2842_v12, %v2725_v26  ;;  %v1302_v10 = vrot.slane %v2851_v6, %v2725_v26  ;;  %v875_v45 = vadd.f32 %v871_v31, %v835_v4 }
 0x130   : >> { %v3307_v14 = vadd.bf16 %v3962_v32, %v1093_v30  ;;  %v876_v50 = vadd.f32 %v872_v27, %v836_v35  ;;  %v3315_v33 = vadd.f32 %v873_v59, %v837_v38  ;;  %v3317_v49 = vadd.f32 %v874_v22, %v838_v46  ;;  %v2305_v47 = vpop.eup %2304  ;;  %v3963_v30 = vld [vmem:[#allocation13_spill] sm:$0xff] }
 0x131   : >> { %v903_v57 = vsel %vm893_vm12, %v3189_v25, %v901_v29  ;;  %v904_v62 = vsel %vm894_vm13, %v3203_v51, %v902_v16  ;;  %2312 = vpow.bf16 %v1068_v58  ;;  %v1108_v21 = vmul.bf16 1069105081, %v3298_v39  ;;  %v2307_v7 = vpop.eup %2306  ;;  %v3967_v38 = vld [vmem:[#allocation17_spill] sm:$0xff] }
 0x132   : >> { %v941_v20 = vsub.bf16 %v2301_v13, %v3934_v28  ;;  %v942_v52 = vsub.bf16 %v2303_v24, %v3934_v28  ;;  %2314 = vpow.bf16 %v1071_v11  ;;  %v3964_v0 = vrot.slane %v2842_v12, %v3963_v30 }
 0x133   : >> { %vm933_vm14 = vcmp.gt.bf16.partialorder %v3224_v15, 0  ;;  %vm934_vm15 = vcmp.gt.bf16.partialorder %v3229_v9, 0  ;;  %vm979_vm0 = vcmp.gt.bf16.partialorder %v3237_v53, 0  ;;  %v1111_v25 = vmul.bf16 1069105081, %v3307_v14 }
 0x134   : >> { %v3331_v44 = vadd.bf16 %v3964_v0, %v1133_v56  ;;  %v906_v51 = vunpack.c.l.bf16 %v903_v57  ;;  %v907_v41 = vunpack.c.l.bf16 %v904_v62  ;;  %vm980_vm1 = vcmp.gt.bf16.partialorder %v3242_v18, 0 }
 0x135   : >> { %v3965_v42 = vrot.slane %v2851_v6, %v3963_v30  ;;  %v987_v17 = vsub.bf16 %v2305_v47, %v3934_v28  ;;  %v988_v31 = vsub.bf16 %v2307_v7, %v3934_v28  ;;  %2316 = vpow.bf16 %v1108_v21 }
 0x136   : >> { %v3966_v27 = vrot.slane %v2853_v40, %v3963_v30  ;;  %v908_v22 = vunpack.c.h.bf16 %v903_v57  ;;  %v943_v1 = vsel %vm933_vm14, %v3224_v15, %v941_v20  ;;  %v944_v29 = vsel %vm934_vm15, %v3229_v9, %v942_v52 }
 0x137   : >> { %v3341_v4 = vadd.bf16 %v3965_v42, %v1133_v56  ;;  %v1148_v16 = vmul.bf16 1069105081, %v3331_v44  ;;  %v2309_v58 = vpop.eup %2308  ;;  %v909_v13 = vunpack.c.h.bf16 %v904_v62  ;;  %vm1025_vm2 = vcmp.gt.bf16.partialorder %v3264_v23, 0  ;;  %v3969_v42 = vld [vmem:[#allocation18_spill] sm:$0xff] }
 0x138   : >> { %v3348_v59 = vadd.bf16 %v3966_v27, %v1173_v55  ;;  %vm1026_vm3 = vcmp.gt.bf16.partialorder %v3271_v60, 0  ;;  %2318 = vpow.bf16 %v1111_v25  ;;  %v2311_v35 = vpop.eup %2310  ;;  %v911_v46 = vmul.f32 %v3967_v38, %v906_v51 }
 0x139   : >> { %v912_v11 = vmul.f32 %v3967_v38, %v907_v41  ;;  %v1151_v24 = vmul.bf16 1069105081, %v3341_v4  ;;  %v3968_v15 = vrot.slane %v3954_v37, %v3963_v30  ;;  %v946_v32 = vunpack.c.l.bf16 %v943_v1 }
 0x13a   : >> { %v947_v56 = vunpack.c.l.bf16 %v944_v29  ;;  %v989_v47 = vsel %vm979_vm0, %v3237_v53, %v987_v17  ;;  %v990_v57 = vsel %vm980_vm1, %v3242_v18, %v988_v31  ;;  %v913_v62 = vmul.f32 %v3967_v38, %v908_v22 }
 0x13b   : >> { %v3361_v9 = vadd.bf16 %v3968_v15, %v1173_v55  ;;  %v1033_v21 = vsub.bf16 %v2309_v58, %v3934_v28  ;;  %2320 = vpow.bf16 %v1148_v16  ;;  %v1188_v7 = vmul.bf16 1069105081, %v3348_v59 }
 0x13c   : >> { %v914_v20 = vmul.f32 %v3967_v38, %v909_v13  ;;  %v948_v52 = vunpack.c.h.bf16 %v943_v1  ;;  %v949_v30 = vunpack.c.h.bf16 %v944_v29  ;;  %v1034_v0 = vsub.bf16 %v2311_v35, %v3934_v28  ;;  %v2313_v53 = vpop.eup %2312  ;;  %v3970_v35 = vld [vmem:[#allocation19_spill] sm:$0xff] }
 0x13d   : >> { %vm1065_vm4 = vcmp.gt.bf16.partialorder %v3280_v63, 0  ;;  %vm1066_vm5 = vcmp.gt.bf16.partialorder %v3288_v54, 0  ;;  %v915_v55 = vadd.f32 %v911_v46, %v875_v45  ;;  %v992_v18 = vunpack.c.l.bf16 %v989_v47  ;;  %v2315_v51 = vpop.eup %2314 }
 0x13e   : >> { %v993_v25 = vunpack.c.l.bf16 %v990_v57  ;;  %2322 = vpow.bf16 %v1151_v24  ;;  %v916_v41 = vadd.f32 %v912_v11, %v876_v50  ;;  %v951_v17 = vmul.f32 %v3969_v42, %v946_v32 }
 0x13f   : >> { %v952_v31 = vmul.f32 %v3969_v42, %v947_v56  ;;  %v994_v27 = vunpack.c.h.bf16 %v989_v47  ;;  %v917_v22 = vadd.f32 %v913_v62, %v3315_v33  ;;  %v995_v1 = vunpack.c.h.bf16 %v990_v57 }
 0x140   : >> { %v1035_v29 = vsel %vm1025_vm2, %v3264_v23, %v1033_v21  ;;  %2324 = vpow.bf16 %v1188_v7  ;;  %v918_v45 = vadd.f32 %v914_v20, %v3317_v49  ;;  %v953_v16 = vmul.f32 %v3969_v42, %v948_v52  ;;  %v2317_v13 = vpop.eup %2316 }
 0x141   : >> { %v954_v58 = vmul.f32 %v3969_v42, %v949_v30  ;;  %v1036_v50 = vsel %vm1026_vm3, %v3271_v60, %v1034_v0  ;;  %v997_v38 = vmul.f32 %v3970_v35, %v992_v18  ;;  %v998_v33 = vmul.f32 %v3970_v35, %v993_v25  ;;  %v3971_v25 = vld [vmem:[#allocation20_spill] sm:$0xff] }
 0x142   : >> { %v1073_v46 = vsub.bf16 %v2313_v53, %v3934_v28  ;;  %v1074_v23 = vsub.bf16 %v2315_v51, %v3934_v28  ;;  %vm1105_vm6 = vcmp.gt.bf16.partialorder %v3298_v39, 0  ;;  %v955_v49 = vadd.f32 %v951_v17, %v915_v55  ;;  %v1253_v53 = vpop.permute.xlu0 %1252 }
 0x143   : >> { %v956_v11 = vadd.f32 %v952_v31, %v916_v41  ;;  %v999_v24 = vmul.f32 %v3970_v35, %v994_v27  ;;  %v1038_v15 = vunpack.c.l.bf16 %v1035_v29  ;;  %v2319_v32 = vpop.eup %2318  ;;  %v1000_v60 = vmul.f32 %v3970_v35, %v995_v1 }
 0x144   : >> { %v1039_v56 = vunpack.c.l.bf16 %v1036_v50  ;;  %v1040_v47 = vunpack.c.h.bf16 %v1035_v29  ;;  %v1041_v57 = vunpack.c.h.bf16 %v1036_v50  ;;  %v957_v62 = vadd.f32 %v953_v16, %v917_v22 }
 0x145   : >> { %v958_v21 = vadd.f32 %v954_v58, %v918_v45  ;;  %vm1106_vm7 = vcmp.gt.bf16.partialorder %v3307_v14, 0  ;;  %v1191_v7 = vmul.bf16 1069105081, %v3361_v9  ;;  %v1001_v20 = vadd.f32 %v997_v38, %v955_v49 }
 0x146   : >> { %v1002_v52 = vadd.f32 %v998_v33, %v956_v11  ;;  %v1075_v30 = vsel %vm1065_vm4, %v3280_v63, %v1073_v46  ;;  %v1076_v0 = vsel %vm1066_vm5, %v3288_v54, %v1074_v23  ;;  %v2321_v55 = vpop.eup %2320  ;;  %v1003_v18 = vadd.f32 %v999_v24, %v957_v62 }
 0x147   : >> { %v1043_v51 = vmul.f32 %v3971_v25, %v1038_v15  ;;  %v1113_v41 = vsub.bf16 %v2317_v13, %v3934_v28  ;;  %v1114_v42 = vsub.bf16 %v2319_v32, %v3934_v28  ;;  %v1004_v17 = vadd.f32 %v1000_v60, %v958_v21  ;;  %v1213_v13 = vpop.permute.xlu1 %1212  ;;  %v3974_v32 = vld [vmem:[#allocation21_spill] sm:$0xff] }
 0x148   : >> { %v1044_v31 = vmul.f32 %v3971_v25, %v1039_v56  ;;  %v1045_v27 = vmul.f32 %v3971_v25, %v1040_v47  ;;  %v1046_v63 = vmul.f32 %v3971_v25, %v1041_v57  ;;  %v1078_v1 = vunpack.c.l.bf16 %v1075_v30 }
 0x149   : >> { %v2323_v22 = vpop.eup %2322  ;;  %v1079_v54 = vunpack.c.l.bf16 %v1076_v0  ;;  %v1080_v29 = vunpack.c.h.bf16 %v1075_v30  ;;  %v3972_v45 = vrot.slane %v2853_v40, %v2684_v2  ;;  %v1081_v58 = vunpack.c.h.bf16 %v1076_v0 }
 0x14a   : >> { %vm1145_vm8 = vcmp.gt.bf16.partialorder %v3331_v44, 0  ;;  %vm1146_vm9 = vcmp.gt.bf16.partialorder %v3341_v4, 0  ;;  %v3419_v50 = vstv %s3393_s13  ;;  %v1047_v38 = vadd.f32 %v1043_v51, %v1001_v20 }
 0x14b   : >> { %v3414_v16 = vadd.bf16 %v3972_v45, %v1253_v53  ;;  %v2325_v35 = vpop.eup %2324  ;;  %v1115_v33 = vsel %vm1105_vm6, %v3298_v39, %v1113_v41  ;;  %v1116_v46 = vsel %vm1106_vm7, %v3307_v14, %v1114_v42  ;;  %2326 = vpow.bf16 %v1191_v7  ;;  %v1373_v14 = vpop.permute.xlu0 %1372 }
 0x14c   : >> { %v1048_v23 = vadd.f32 %v1044_v31, %v1002_v52  ;;  %v1049_v49 = vadd.f32 %v1045_v27, %v1003_v18  ;;  %v1050_v11 = vadd.f32 %v1046_v63, %v1004_v17  ;;  %vm1185_vm10 = vcmp.gt.bf16.partialorder %v3348_v59, 0  ;;  %v1293_v51 = vpop.permute.xlu1 %1292 }
 0x14d   : >> { %v3973_v24 = vrot.slane %v3954_v37, %v2684_v2  ;;  %v1083_v60 = vmul.f32 %v3974_v32, %v1078_v1  ;;  %v1084_v56 = vmul.f32 %v3974_v32, %v1079_v54  ;;  %v1085_v39 = vmul.f32 %v3974_v32, %v1080_v29 }
 0x14e   : >> { %v1268_v47 = vmul.bf16 1069105081, %v3414_v16  ;;  %v1086_v57 = vmul.f32 %v3974_v32, %v1081_v58  ;;  %v1118_v62 = vunpack.c.l.bf16 %v1115_v33  ;;  %v1119_v21 = vunpack.c.l.bf16 %v1116_v46 }
 0x14f   : >> { %v3431_v15 = vadd.bf16 %v3973_v24, %v1253_v53  ;;  %v3441_v7 = vadd.bf16 %v1218_v61, %v1213_v13  ;;  %v1120_v20 = vunpack.c.h.bf16 %v1115_v33  ;;  %v1153_v52 = vsub.bf16 %v2321_v55, %v3934_v28 }
 0x150   : >> { %v1154_v30 = vsub.bf16 %v2323_v22, %v3934_v28  ;;  %v3448_v0 = vadd.bf16 %v1222_v43, %v1213_v13  ;;  %v1121_v53 = vunpack.c.h.bf16 %v1116_v46  ;;  %v3455_v61 = vadd.bf16 %v1378_v19, %v1373_v14  ;;  %v3975_v22 = vld [vmem:[#allocation22_spill] sm:$0xff]  ;;  %v1333_v33 = vpop.permute.xlu1 %1332 }
 0x151   : >> { %v1271_v18 = vmul.bf16 1069105081, %v3431_v15  ;;  %v1228_v25 = vmul.bf16 1069105081, %v3441_v7  ;;  %v1193_v55 = vsub.bf16 %v2325_v35, %v3934_v28  ;;  %2328 = vpow.bf16 %v1268_v47 }
 0x152   : >> { %v1231_v41 = vmul.bf16 1069105081, %v3448_v0  ;;  %v3462_v2 = vadd.bf16 %v1382_v36, %v1373_v14  ;;  %v1087_v43 = vadd.f32 %v1083_v60, %v1047_v38  ;;  %v1088_v42 = vadd.f32 %v1084_v56, %v1048_v23  ;;  %v3976_v14 = vld [vmem:[#allocation23_spill] sm:$0xff] }
 0x153   : >> { %v1089_v17 = vadd.f32 %v1085_v39, %v1049_v49  ;;  %2330 = vpow.bf16 %v1228_v25  ;;  %v1155_v19 = vsel %vm1145_vm8, %v3331_v44, %v1153_v52  ;;  %v1156_v31 = vsel %vm1146_vm9, %v3341_v4, %v1154_v30 }
 0x154   : >> { %2332 = vpow.bf16 %v1231_v41  ;;  %v1388_v27 = vmul.bf16 1069105081, %v3455_v61  ;;  %v1090_v63 = vadd.f32 %v1086_v57, %v1050_v11  ;;  %v1123_v1 = vmul.f32 %v3975_v22, %v1118_v62 }
 0x155   : >> { %v1124_v36 = vmul.f32 %v3975_v22, %v1119_v21  ;;  %vm1186_vm11 = vcmp.gt.bf16.partialorder %v3361_v9, 0  ;;  %2334 = vpow.bf16 %v1271_v18  ;;  %v1125_v54 = vmul.f32 %v3975_v22, %v1120_v20 }
 0x156   : >> { %v1195_v44 = vsel %vm1185_vm10, %v3348_v59, %v1193_v55  ;;  %v1391_v29 = vmul.bf16 1069105081, %v3462_v2  ;;  %v1338_v4 = vrot.slane %v2853_v40, %v2725_v26  ;;  %v2327_v45 = vpop.eup %2326  ;;  %v1126_v58 = vmul.f32 %v3975_v22, %v1121_v53 }
 0x157   : >> { %v1158_v13 = vunpack.c.l.bf16 %v1155_v19  ;;  %v1159_v35 = vunpack.c.l.bf16 %v1156_v31  ;;  %v1342_v38 = vrot.slane %v3954_v37, %v2725_v26  ;;  %v1160_v46 = vunpack.c.h.bf16 %v1155_v19 }
 0x158   : >> { %v1161_v23 = vunpack.c.h.bf16 %v1156_v31  ;;  %2336 = vpow.bf16 %v1388_v27  ;;  %v3489_v59 = vadd.bf16 %v1298_v8, %v1293_v51  ;;  %v1127_v49 = vadd.f32 %v1123_v1, %v1087_v43  ;;  %v1493_v27 = vpop.permute.xlu0 %1492 }
 0x159   : >> { %v1198_v11 = vunpack.c.l.bf16 %v1195_v44  ;;  %v1200_v24 = vunpack.c.h.bf16 %v1195_v44  ;;  %v3494_v32 = vadd.bf16 %v1302_v10, %v1293_v51  ;;  %v1128_v60 = vadd.f32 %v1124_v36, %v1088_v42 }
 0x15a   : >> { %v1194_v56 = vsub.bf16 %v2327_v45, %v3934_v28  ;;  %2338 = vpow.bf16 %v1391_v29  ;;  %v3497_v39 = vadd.bf16 %v1338_v4, %v1333_v33  ;;  %v1129_v47 = vadd.f32 %v1125_v54, %v1089_v17 }
 0x15b   : >> { %v1163_v57 = vmul.f32 %v3976_v14, %v1158_v13  ;;  %v1164_v8 = vmul.f32 %v3976_v14, %v1159_v35  ;;  %v3501_v62 = vadd.bf16 %v1342_v38, %v1333_v33  ;;  %v1130_v21 = vadd.f32 %v1126_v58, %v1090_v63 }
 0x15c   : >> { %v1165_v20 = vmul.f32 %v3976_v14, %v1160_v46  ;;  %v1166_v26 = vmul.f32 %v3976_v14, %v1161_v23  ;;  %v1308_v10 = vmul.bf16 1069105081, %v3489_v59  ;;  %v2329_v52 = vpop.eup %2328  ;;  %v1203_v30 = vmul.f32 %v3181_v5, %v1198_v11 }
 0x15d   : >> { %v1205_v53 = vmul.f32 %v3181_v5, %v1200_v24  ;;  %vm1265_vm12 = vcmp.gt.bf16.partialorder %v3414_v16, 0  ;;  %v1311_v18 = vmul.bf16 1069105081, %v3494_v32  ;;  %v1196_v51 = vsel %vm1186_vm11, %v3361_v9, %v1194_v56 }
 0x15e   : >> { %v2331_v25 = vpop.eup %2330  ;;  %vm1266_vm13 = vcmp.gt.bf16.partialorder %v3431_v15, 0  ;;  %v1348_v55 = vmul.bf16 1069105081, %v3497_v39  ;;  %v1498_v41 = vrot.slane %v2853_v40, %v2772_v48  ;;  %v1167_v42 = vadd.f32 %v1163_v57, %v1127_v49 }
 0x15f   : >> { %v2333_v43 = vpop.eup %2332  ;;  %v1168_v17 = vadd.f32 %v1164_v8, %v1128_v60  ;;  %v1233_v19 = vsub.bf16 %v2331_v25, %v3934_v28  ;;  %v1351_v31 = vmul.bf16 1069105081, %v3501_v62  ;;  %v1169_v22 = vadd.f32 %v1165_v20, %v1129_v47 }
 0x160   : >> { %v2335_v63 = vpop.eup %2334  ;;  %v1170_v1 = vadd.f32 %v1166_v26, %v1130_v21  ;;  %v1242_v36 = vstv %s3484_s14  ;;  %2340 = vpow.bf16 %v1308_v10  ;;  %v1199_v9 = vunpack.c.l.bf16 %v1196_v51 }
 0x161   : >> { %v1201_v54 = vunpack.c.h.bf16 %v1196_v51  ;;  %v1234_v44 = vsub.bf16 %v2333_v43, %v3934_v28  ;;  %2342 = vpow.bf16 %v1311_v18  ;;  %v1273_v29 = vsub.bf16 %v2329_v52, %v3934_v28 }
 0x162   : >> { %vm1225_vm14 = vcmp.gt.bf16.partialorder %v3441_v7, 0  ;;  %2344 = vpow.bf16 %v1348_v55  ;;  %v3529_v4 = vadd.bf16 %v1498_v41, %v1493_v27  ;;  %v1207_v58 = vadd.f32 %v1203_v30, %v1167_v42 }
 0x163   : >> { %v2337_v45 = vpop.eup %2336  ;;  %v1274_v13 = vsub.bf16 %v2335_v63, %v3934_v28  ;;  %v1235_v35 = vsel %vm1225_vm14, %v3441_v7, %v1233_v19  ;;  %2346 = vpow.bf16 %v1351_v31  ;;  %v1209_v38 = vadd.f32 %v1205_v53, %v1169_v22 }
 0x164   : >> { %vm1226_vm15 = vcmp.gt.bf16.partialorder %v3448_v0, 0  ;;  %v3537_v33 = vstv %s3505_s15  ;;  %v3540_v46 = vstv %s3507_s16  ;;  %v1204_v49 = vmul.f32 %v3181_v5, %v1199_v9 }
 0x165   : >> { %v2339_v23 = vpop.eup %2338  ;;  %v1206_v11 = vmul.f32 %v3181_v5, %v1201_v54  ;;  %v1236_v24 = vsel %vm1226_vm15, %v3448_v0, %v1234_v44  ;;  %vm1385_vm0 = vcmp.gt.bf16.partialorder %v3455_v61, 0  ;;  %v1275_v7 = vsel %vm1265_vm12, %v3414_v16, %v1273_v29 }
 0x166   : >> { %v1238_v60 = vunpack.c.l.bf16 %v1235_v35  ;;  %v1393_v56 = vsub.bf16 %v2337_v45, %v3934_v28  ;;  %v1508_v47 = vmul.bf16 1069105081, %v3529_v4  ;;  %v1276_v14 = vsel %vm1266_vm13, %v3431_v15, %v1274_v13  ;;  %v1413_v15 = vpop.permute.xlu1 %1412 }
 0x167   : >> { %v1240_v57 = vunpack.c.h.bf16 %v1235_v35  ;;  %vm1386_vm1 = vcmp.gt.bf16.partialorder %v3462_v2, 0  ;;  %v1502_v5 = vrot.slane %v3954_v37, %v2772_v48  ;;  %v1239_v0 = vunpack.c.l.bf16 %v1236_v24 }
 0x168   : >> { %v1241_v8 = vunpack.c.h.bf16 %v1236_v24  ;;  %v1394_v16 = vsub.bf16 %v2339_v23, %v3934_v28  ;;  %v3559_v21 = vstv %s3524_s3  ;;  %v1208_v20 = vadd.f32 %v1204_v49, %v1168_v17 }
 0x169   : >> { %v1210_v26 = vadd.f32 %v1206_v11, %v1170_v1  ;;  %v1278_v10 = vunpack.c.l.bf16 %v1275_v7  ;;  %v1280_v52 = vunpack.c.h.bf16 %v1275_v7  ;;  %vm1305_vm2 = vcmp.gt.bf16.partialorder %v3489_v59, 0 }
 0x16a   : >> { %v1279_v30 = vunpack.c.l.bf16 %v1276_v14  ;;  %v1243_v53 = vmul.f32 %v1242_v36, %v1238_v60  ;;  %v1395_v18 = vsel %vm1385_vm0, %v3455_v61, %v1393_v56  ;;  %2348 = vpow.bf16 %v1508_v47 }
 0x16b   : >> { %v2341_v25 = vpop.eup %2340  ;;  %v1245_v51 = vmul.f32 %v1242_v36, %v1240_v57  ;;  %vm1306_vm3 = vcmp.gt.bf16.partialorder %v3494_v32, 0  ;;  %v3567_v55 = vstv %s3533_s23  ;;  %v3569_v41 = vadd.bf16 %v1502_v5, %v1493_v27 }
 0x16c   : >> { %v1418_v43 = vrot.slane %v2853_v40, %v2745_v34  ;;  %v2343_v42 = vpop.eup %2342  ;;  %v1244_v17 = vmul.f32 %v1242_v36, %v1239_v0  ;;  %v1246_v19 = vmul.f32 %v1242_v36, %v1241_v8  ;;  %v1396_v31 = vsel %vm1386_vm1, %v3462_v2, %v1394_v16 }
 0x16d   : >> { %vm1345_vm4 = vcmp.gt.bf16.partialorder %v3497_v39, 0  ;;  %vm1346_vm5 = vcmp.gt.bf16.partialorder %v3501_v62, 0  ;;  %v1422_v61 = vrot.slane %v3954_v37, %v2745_v34  ;;  %v2345_v63 = vpop.eup %2344  ;;  %v1281_v27 = vunpack.c.h.bf16 %v1276_v14  ;;  %v1453_v34 = vpop.permute.xlu1 %1452 }
 0x16e   : >> { %v1283_v22 = vmul.f32 %v3419_v50, %v1278_v10  ;;  %v1285_v1 = vmul.f32 %v3419_v50, %v1280_v52  ;;  %v1398_v9 = vunpack.c.l.bf16 %v1395_v18  ;;  %v2347_v54 = vpop.eup %2346  ;;  %v1284_v36 = vmul.f32 %v3419_v50, %v1279_v30 }
 0x16f   : >> { %v1247_v44 = vadd.f32 %v1243_v53, %v1207_v58  ;;  %v1400_v29 = vunpack.c.h.bf16 %v1395_v18  ;;  %v1313_v2 = vsub.bf16 %v2341_v25, %v3934_v28  ;;  %v1249_v45 = vadd.f32 %v1245_v51, %v1209_v38 }
 0x170   : >> { %v1399_v13 = vunpack.c.l.bf16 %v1396_v31  ;;  %v1401_v35 = vunpack.c.h.bf16 %v1396_v31  ;;  %v1511_v23 = vmul.bf16 1069105081, %v3569_v41  ;;  %v1248_v49 = vadd.f32 %v1244_v17, %v1208_v20 }
 0x171   : >> { %v1250_v11 = vadd.f32 %v1246_v19, %v1210_v26  ;;  %v1314_v24 = vsub.bf16 %v2343_v42, %v3934_v28  ;;  %v3586_v7 = vadd.bf16 %v1418_v43, %v1413_v15  ;;  %v1286_v60 = vmul.f32 %v3419_v50, %v1281_v27  ;;  %v1533_v53 = vpop.permute.xlu1 %1532 }
 0x172   : >> { %v3590_v56 = vmul.f32 %v3537_v33, %v1398_v9  ;;  %v1353_v58 = vsub.bf16 %v2345_v63, %v3934_v28  ;;  %v1354_v38 = vsub.bf16 %v2347_v54, %v3934_v28  ;;  %vm1505_vm6 = vcmp.gt.bf16.partialorder %v3529_v4, 0 }
 0x173   : >> { %v3596_v47 = vmul.f32 %v3537_v33, %v1400_v29  ;;  %v1287_v14 = vadd.f32 %v1283_v22, %v1247_v44  ;;  %v1315_v57 = vsel %vm1305_vm2, %v3489_v59, %v1313_v2  ;;  %v3601_v5 = vadd.bf16 %v1422_v61, %v1413_v15 }
 0x174   : >> { %v3604_v50 = vmul.f32 %v3537_v33, %v1399_v13  ;;  %v3607_v0 = vmul.f32 %v3537_v33, %v1401_v35  ;;  %v1289_v8 = vadd.f32 %v1285_v1, %v1249_v45  ;;  %2350 = vpow.bf16 %v1511_v23 }
 0x175   : >> { %v1288_v16 = vadd.f32 %v1284_v36, %v1248_v49  ;;  %v1290_v20 = vadd.f32 %v1286_v60, %v1250_v11  ;;  %v1316_v26 = vsel %vm1306_vm3, %v3494_v32, %v1314_v24  ;;  %v1428_v10 = vmul.bf16 1069105081, %v3586_v7  ;;  %v2349_v52 = vpop.eup %2348  ;;  %v1573_v44 = vpop.permute.xlu1 %1572 }
 0x176   : >> { %v1318_v59 = vunpack.c.l.bf16 %v1315_v57  ;;  %v1320_v15 = vunpack.c.h.bf16 %v1315_v57  ;;  %v1355_v30 = vsel %vm1345_vm4, %v3497_v39, %v1353_v58  ;;  %v1356_v33 = vsel %vm1346_vm5, %v3501_v62, %v1354_v38 }
 0x177   : >> { %2352 = vpow.bf16 %v1428_v10  ;;  %v1431_v18 = vmul.bf16 1069105081, %v3601_v5  ;;  %v1458_v32 = vrot.slane %v2842_v12, %v2772_v48  ;;  %v1462_v25 = vrot.slane %v2851_v6, %v2772_v48 }
 0x178   : >> { %v1319_v51 = vunpack.c.l.bf16 %v1316_v26  ;;  %v1321_v43 = vunpack.c.h.bf16 %v1316_v26  ;;  %v1538_v42 = vrot.slane %v2842_v12, %v2802_v3  ;;  %v1542_v39 = vrot.slane %v2851_v6, %v2802_v3 }
 0x179   : >> { %v1513_v62 = vsub.bf16 %v2349_v52, %v3934_v28  ;;  %2354 = vpow.bf16 %v1431_v18  ;;  %v3629_v17 = vadd.bf16 %v1458_v32, %v1453_v34  ;;  %v3631_v19 = vadd.bf16 %v1462_v25, %v1453_v34 }
 0x17a   : >> { %v1358_v31 = vunpack.c.l.bf16 %v1355_v30  ;;  %v1359_v61 = vunpack.c.l.bf16 %v1356_v33  ;;  %v3633_v63 = vadd.bf16 %v1538_v42, %v1533_v53  ;;  %v3635_v48 = vadd.bf16 %v1542_v39, %v1533_v53 }
 0x17b   : >> { %v1323_v27 = vmul.f32 %v3540_v46, %v1318_v59  ;;  %v1325_v12 = vmul.f32 %v3540_v46, %v1320_v15  ;;  %v1360_v22 = vunpack.c.h.bf16 %v1355_v30  ;;  %vm1506_vm7 = vcmp.gt.bf16.partialorder %v3569_v41, 0 }
 0x17c   : >> { %v1578_v6 = vrot.slane %v2853_v40, %v2802_v3  ;;  %v1324_v1 = vmul.f32 %v3540_v46, %v1319_v51  ;;  %v1361_v9 = vunpack.c.h.bf16 %v1356_v33  ;;  %v1468_v54 = vmul.bf16 1069105081, %v3629_v17 }
 0x17d   : >> { %v1471_v36 = vmul.bf16 1069105081, %v3631_v19  ;;  %v1326_v29 = vmul.f32 %v3540_v46, %v1321_v43  ;;  %v3651_v2 = vsel %vm1505_vm6, %v3529_v4, %v1513_v62  ;;  %v1548_v45 = vmul.bf16 1069105081, %v3633_v63 }
 0x17e   : >> { %v1551_v40 = vmul.bf16 1069105081, %v3635_v48  ;;  %v1363_v13 = vmul.f32 %v3559_v21, %v1358_v31  ;;  %v1364_v35 = vmul.f32 %v3559_v21, %v1359_v61  ;;  %2356 = vpow.bf16 %v1468_v54 }
 0x17f   : >> { %v1582_v23 = vrot.slane %v3954_v37, %v2802_v3  ;;  %v2351_v34 = vpop.eup %2350  ;;  %v1327_v49 = vadd.f32 %v1323_v27, %v1287_v14  ;;  %v1365_v46 = vmul.f32 %v3559_v21, %v1360_v22  ;;  %2358 = vpow.bf16 %v1471_v36 }
 0x180   : >> { %v3660_v11 = vadd.bf16 %v1578_v6, %v1573_v44  ;;  %v1328_v4 = vadd.f32 %v1324_v1, %v1288_v16  ;;  %v1366_v24 = vmul.f32 %v3559_v21, %v1361_v9  ;;  %2360 = vpow.bf16 %v1548_v45 }
 0x181   : >> { %v3663_v60 = vadd.bf16 %v1582_v23, %v1573_v44  ;;  %v1329_v58 = vadd.f32 %v1325_v12, %v1289_v8  ;;  %v1518_v38 = vunpack.c.l.bf16 %v3651_v2  ;;  %2362 = vpow.bf16 %v1551_v40 }
 0x182   : >> { %v1588_v3 = vmul.bf16 1069105081, %v3660_v11  ;;  %v2353_v37 = vpop.eup %2352  ;;  %v1330_v14 = vadd.f32 %v1326_v29, %v1290_v20  ;;  %v1367_v57 = vadd.f32 %v1363_v13, %v1327_v49  ;;  %v1368_v16 = vadd.f32 %v1364_v35, %v1328_v4 }
 0x183   : >> { %v1514_v21 = vsub.bf16 %v2351_v34, %v3934_v28  ;;  %v1369_v26 = vadd.f32 %v1365_v46, %v1329_v58  ;;  %v1433_v10 = vsub.bf16 %v2353_v37, %v3934_v28  ;;  %v1591_v8 = vmul.bf16 1069105081, %v3663_v60 }
 0x184   : >> { %2364 = vpow.bf16 %v1588_v3  ;;  %v2355_v52 = vpop.eup %2354  ;;  %v1370_v59 = vadd.f32 %v1366_v24, %v1330_v14  ;;  %v1520_v15 = vunpack.c.h.bf16 %v3651_v2  ;;  %v1442_v30 = vstv %s3643_s24 }
 0x185   : >> { %vm1425_vm8 = vcmp.gt.bf16.partialorder %v3586_v7, 0  ;;  %v3678_v33 = vmul.f32 %v3567_v55, %v1518_v38  ;;  %vm1426_vm9 = vcmp.gt.bf16.partialorder %v3601_v5, 0  ;;  %v1434_v20 = vsub.bf16 %v2355_v52, %v3934_v28 }
 0x186   : >> { %v1435_v53 = vsel %vm1425_vm8, %v3586_v7, %v1433_v10  ;;  %v1516_v18 = vsel %vm1506_vm7, %v3569_v41, %v1514_v21  ;;  %v1407_v32 = vadd.f32 %v3590_v56, %v1367_v57  ;;  %v1408_v43 = vadd.f32 %v3604_v50, %v1368_v16 }
 0x187   : >> { %v1438_v25 = vunpack.c.l.bf16 %v1435_v53  ;;  %v1440_v51 = vunpack.c.h.bf16 %v1435_v53  ;;  %v1409_v42 = vadd.f32 %v3596_v47, %v1369_v26  ;;  %v1436_v39 = vsel %vm1426_vm9, %v3601_v5, %v1434_v20 }
 0x188   : >> { %2366 = vpow.bf16 %v1591_v8  ;;  %v1439_v62 = vunpack.c.l.bf16 %v1436_v39  ;;  %v1441_v31 = vunpack.c.h.bf16 %v1436_v39  ;;  %v1519_v12 = vunpack.c.l.bf16 %v1516_v18 }
 0x189   : >> { %v1443_v7 = vmul.f32 %v1442_v30, %v1438_v25  ;;  %v1445_v61 = vmul.f32 %v1442_v30, %v1440_v51  ;;  %v2357_v27 = vpop.eup %2356  ;;  %v1410_v41 = vadd.f32 %v3607_v0, %v1370_v59  ;;  %v1482_v22 = vstv %s3666_s30 }
 0x18a   : >> { %v1562_v6 = vstv %s3668_s5  ;;  %v2359_v56 = vpop.eup %2358  ;;  %v1521_v1 = vunpack.c.h.bf16 %v1516_v18  ;;  %v1444_v9 = vmul.f32 %v1442_v30, %v1439_v62  ;;  %vm1465_vm10 = vcmp.gt.bf16.partialorder %v3629_v17, 0 }
 0x18b   : >> { %vm1466_vm11 = vcmp.gt.bf16.partialorder %v3631_v19, 0  ;;  %v2361_v47 = vpop.eup %2360  ;;  %v1446_v5 = vmul.f32 %v1442_v30, %v1441_v31  ;;  %v1473_v50 = vsub.bf16 %v2357_v27, %v3934_v28  ;;  %v1474_v54 = vsub.bf16 %v2359_v56, %v3934_v28 }
 0x18c   : >> { %vm1545_vm12 = vcmp.gt.bf16.partialorder %v3633_v63, 0  ;;  %v2363_v0 = vpop.eup %2362  ;;  %v1447_v36 = vadd.f32 %v1443_v7, %v1407_v32  ;;  %v1449_v44 = vadd.f32 %v1445_v61, %v1409_v42  ;;  %vm1546_vm13 = vcmp.gt.bf16.partialorder %v3635_v48, 0 }
 0x18d   : >> { %v1553_v29 = vsub.bf16 %v2361_v47, %v3934_v28  ;;  %v1448_v45 = vadd.f32 %v1444_v9, %v1408_v43  ;;  %v1475_v40 = vsel %vm1465_vm10, %v3629_v17, %v1473_v50  ;;  %v1476_v13 = vsel %vm1466_vm11, %v3631_v19, %v1474_v54 }
 0x18e   : >> { %v1554_v35 = vsub.bf16 %v2363_v0, %v3934_v28  ;;  %v1478_v34 = vunpack.c.l.bf16 %v1475_v40  ;;  %v1479_v49 = vunpack.c.l.bf16 %v1476_v13  ;;  %v1480_v46 = vunpack.c.h.bf16 %v1475_v40 }
 0x18f   : >> { %v2365_v23 = vpop.eup %2364  ;;  %v1481_v4 = vunpack.c.h.bf16 %v1476_v13  ;;  %v1450_v24 = vadd.f32 %v1446_v5, %v1410_v41  ;;  %v1555_v58 = vsel %vm1545_vm12, %v3633_v63, %v1553_v29  ;;  %v1524_v63 = vmul.f32 %v3567_v55, %v1519_v12 }
 0x190   : >> { %v1556_v38 = vsel %vm1546_vm13, %v3635_v48, %v1554_v35  ;;  %v1593_v3 = vsub.bf16 %v2365_v23, %v3934_v28  ;;  %v1483_v37 = vmul.f32 %v1482_v22, %v1478_v34  ;;  %v1484_v17 = vmul.f32 %v1482_v22, %v1479_v49 }
 0x191   : >> { %v1485_v19 = vmul.f32 %v1482_v22, %v1480_v46  ;;  %v1486_v14 = vmul.f32 %v1482_v22, %v1481_v4  ;;  %v1558_v57 = vunpack.c.l.bf16 %v1555_v58  ;;  %v1559_v16 = vunpack.c.l.bf16 %v1556_v38 }
 0x192   : >> { %v1560_v21 = vunpack.c.h.bf16 %v1555_v58  ;;  %v1561_v26 = vunpack.c.h.bf16 %v1556_v38  ;;  %v1487_v8 = vadd.f32 %v1483_v37, %v1447_v36  ;;  %v1488_v52 = vadd.f32 %v1484_v17, %v1448_v45 }
 0x193   : >> { %v2367_v10 = vpop.eup %2366  ;;  %v1489_v59 = vadd.f32 %v1485_v19, %v1449_v44  ;;  %v1490_v30 = vadd.f32 %v1486_v14, %v1450_v24  ;;  %v1525_v48 = vmul.f32 %v3567_v55, %v1520_v15  ;;  %v1526_v20 = vmul.f32 %v3567_v55, %v1521_v1 }
 0x194   : >> { %v1602_v53 = vstv %s3698_s6  ;;  %v1563_v18 = vmul.f32 %v1562_v6, %v1558_v57  ;;  %v1565_v32 = vmul.f32 %v1562_v6, %v1560_v21  ;;  %vm1585_vm14 = vcmp.gt.bf16.partialorder %v3660_v11, 0 }
 0x195   : >> { %vm1586_vm15 = vcmp.gt.bf16.partialorder %v3663_v60, 0  ;;  %v1527_v25 = vadd.f32 %v3678_v33, %v1487_v8  ;;  %v1529_v51 = vadd.f32 %v1525_v48, %v1489_v59  ;;  %v1594_v43 = vsub.bf16 %v2367_v10, %v3934_v28 }
 0x196   : >> { %v1595_v42 = vsel %vm1585_vm14, %v3660_v11, %v1593_v3  ;;  %v1528_v2 = vadd.f32 %v1524_v63, %v1488_v52  ;;  %v1530_v39 = vadd.f32 %v1526_v20, %v1490_v30  ;;  %v1564_v15 = vmul.f32 %v1562_v6, %v1559_v16 }
 0x197   : >> { %v1566_v62 = vmul.f32 %v1562_v6, %v1561_v26  ;;  %v1596_v55 = vsel %vm1586_vm15, %v3663_v60, %v1594_v43  ;;  %v1598_v31 = vunpack.c.l.bf16 %v1595_v42  ;;  %v1600_v7 = vunpack.c.h.bf16 %v1595_v42 }
 0x198   : >> { %v1611_v61 = vstv %s2591_s25  ;;  %v1599_v27 = vunpack.c.l.bf16 %v1596_v55  ;;  %v1601_v12 = vunpack.c.h.bf16 %v1596_v55  ;;  %v1567_v41 = vadd.f32 %v1563_v18, %v1527_v25 }
 0x199   : >> { %v1569_v22 = vadd.f32 %v1565_v32, %v1529_v51  ;;  %v1603_v56 = vmul.f32 %v1602_v53, %v1598_v31  ;;  %v1605_v33 = vmul.f32 %v1602_v53, %v1600_v7  ;;  %v1568_v1 = vadd.f32 %v1564_v15, %v1528_v2 }
 0x19a   : >> { %v1570_v9 = vadd.f32 %v1566_v62, %v1530_v39  ;;  %v1604_v28 = vmul.f32 %v1602_v53, %v1599_v27  ;;  %v1606_v47 = vmul.f32 %v1602_v53, %v1601_v12 }
 0x19b   : >> { %v1607_v11 = vadd.f32 %v1603_v56, %v1567_v41  ;;  %v1609_v5 = vadd.f32 %v1605_v33, %v1569_v22 }
 0x19c   : >> { %v1608_v50 = vadd.f32 %v1604_v28, %v1568_v1  ;;  %v1610_v54 = vadd.f32 %v1606_v47, %v1570_v9 }
 0x19d   : >> { %v1612_v6 = vadd.f32 %v1611_v61, %v1607_v11  ;;  %v1614_v0 = vadd.f32 %v1611_v61, %v1609_v5 }
 0x19e   : >> { %v1613_v60 = vadd.f32 %v1611_v61, %v1608_v50  ;;  %v1615_v36 = vadd.f32 %v1611_v61, %v1610_v54 }
 0x19f   : >> { %v1616_v44 = vsub.f32 0.0, %v1612_v6  ;;  %v1618_v29 = vsub.f32 0.0, %v1614_v0 }
 0x1a0   : >> { %v1617_v45 = vsub.f32 0.0, %v1613_v60  ;;  %v1619_v40 = vsub.f32 0.0, %v1615_v36 }
 0x1a1   : >> { %v1620_v13 = vmul.f32 1.442695, %v1616_v44  ;;  %v1624_v35 = vmul.f32 1.442695, %v1618_v29 }
 0x1a2   : >> { %v1622_v23 = vmul.f32 1.442695, %v1617_v45  ;;  %v1626_v34 = vmul.f32 1.442695, %v1619_v40 }
 0x1a3   : >> { %2368 = vpow2.f32 %v1620_v13 }
 0x1a4   : >> { %2370 = vpow2.f32 %v1622_v23 }
 0x1a5   : >> { %2372 = vpow2.f32 %v1624_v35 }
 0x1a6   : >> { %2374 = vpow2.f32 %v1626_v34 }
 0x1ad   : >> { %v2369_v49 = vpop.eup %2368 }
 0x1ae   : >> { %v2371_v46 = vpop.eup %2370  ;;  %v1628_v4 = vadd.f32 1.0, %v2369_v49 }
 0x1af   : >> { %v2373_v24 = vpop.eup %2372  ;;  %v1629_v58 = vadd.f32 1.0, %v2371_v46 }
 0x1b0   : >> { %v2375_v38 = vpop.eup %2374  ;;  %v1630_v3 = vadd.f32 1.0, %v2373_v24  ;;  %2376 = vrcp.f32 %v1628_v4 }
 0x1b1   : >> { %v1631_v37 = vadd.f32 1.0, %v2375_v38  ;;  %2378 = vrcp.f32 %v1629_v58 }
 0x1b2   : >> { %2380 = vrcp.f32 %v1630_v3 }
 0x1b3   : >> { %2382 = vrcp.f32 %v1631_v37 }
 0x1ba   : >> { %v2377_v17 = vpop.eup %2376  ;;  %299 = sbr.rel (!%p297_p3) target bundleno = 65 (0x41), region = 149 }
 0x1bb   : >> { %v2379_v19 = vpop.eup %2378 }
 0x1bc   : >> { %v2381_v14 = vpop.eup %2380  ;;  %v2111_v57 = vpack.c.bf16 %v2379_v19, %v2377_v17 }
 0x1bd   : >> { %v2383_v16 = vpop.eup %2382 }
 0x1be   : >> { %v2112_v21 = vpack.c.bf16 %v2383_v16, %v2381_v14  ;;  %1653 = vst [vmem:[%s1652_s7] sm:$0xff] %v2111_v57 }
 0x1c0   : >> { %1654 = vst [vmem:[%s1652_s7 + $0x8] sm:$0xff] %v2112_v21 }
 0x1c1   : > { %1661 = sbr.rel (!%p3977_p7) target bundleno = 489 (0x1e9), region = 74  ;;  %s2114_s29 = sshll.u32 (%p3977_p7), %s2437_s19, 3 }
 0x1c2   : > { %s3738_s25 = scalar_lea.vmem (%p3977_p7), %s3884_s4, %s2114_s29 }
 0x1c7   : > { %v1821_v26 = vld [vmem:[%s2601_s17] sm:$0xff] (%p3977_p7)  ;;  %v1823_v10 = vld [vmem:[%s2601_s17 + $0x8] sm:$0xff] (%p3977_p7)  ;;  %v1825_v8 = vld [vmem:[%s2601_s17 + $0x10] sm:$0xff] (%p3977_p7) }
 0x1c8   : > { %v1827_v52 = vld [vmem:[%s2601_s17 + $0x18] sm:$0xff]  ;;  %v1829_v59 = vld [vmem:[%s2601_s17 + $0x20] sm:$0xff]  ;;  %v1831_v30 = vld [vmem:[%s2601_s17 + $0x28] sm:$0xff]  ;;  %1822 = vst [vmem:[%s3738_s25] sm:$0xff] %v1821_v26 }
 0x1c9   : > { %1824 = vst [vmem:[%s3738_s25 + $0x10] sm:$0xff] %v1823_v10  ;;  %1826 = vst [vmem:[%s3738_s25 + $0x20] sm:$0xff] %v1825_v8  ;;  %v1833_v63 = vld [vmem:[%s2601_s17 + $0x30] sm:$0xff]  ;;  %v1835_v48 = vld [vmem:[%s2601_s17 + $0x38] sm:$0xff] }
 0x1ca   : > { %1828 = vst [vmem:[%s3738_s25 + $0x30] sm:$0xff] %v1827_v52  ;;  %1830 = vst [vmem:[%s3738_s25 + $0x40] sm:$0xff] %v1829_v59  ;;  %v1837_v20 = vld [vmem:[%s2601_s17 + $0x40] sm:$0xff]  ;;  %v1839_v53 = vld [vmem:[%s2601_s17 + $0x48] sm:$0xff] }
 0x1cb   : > { %1832 = vst [vmem:[%s3738_s25 + $0x50] sm:$0xff] %v1831_v30  ;;  %1834 = vst [vmem:[%s3738_s25 + $0x60] sm:$0xff] %v1833_v63  ;;  %v1841_v18 = vld [vmem:[%s2601_s17 + $0x50] sm:$0xff]  ;;  %v1843_v32 = vld [vmem:[%s2601_s17 + $0x58] sm:$0xff] }
 0x1cc   : > { %1836 = vst [vmem:[%s3738_s25 + $0x70] sm:$0xff] %v1835_v48  ;;  %1838 = vst [vmem:[%s3738_s25 + $0x80] sm:$0xff] %v1837_v20  ;;  %v1845_v25 = vld [vmem:[%s2601_s17 + $0x60] sm:$0xff]  ;;  %v1847_v51 = vld [vmem:[%s2601_s17 + $0x68] sm:$0xff] }
 0x1cd   : > { %1840 = vst [vmem:[%s3738_s25 + $0x90] sm:$0xff] %v1839_v53  ;;  %1842 = vst [vmem:[%s3738_s25 + $0xa0] sm:$0xff] %v1841_v18  ;;  %v1849_v43 = vld [vmem:[%s2601_s17 + $0x70] sm:$0xff]  ;;  %v1851_v42 = vld [vmem:[%s2601_s17 + $0x78] sm:$0xff] }
 0x1ce   : > { %1844 = vst [vmem:[%s3738_s25 + $0xb0] sm:$0xff] %v1843_v32  ;;  %1846 = vst [vmem:[%s3738_s25 + $0xc0] sm:$0xff] %v1845_v25  ;;  %v1853_v2 = vld [vmem:[%s2601_s17 + $0x80] sm:$0xff]  ;;  %v1855_v39 = vld [vmem:[%s2601_s17 + $0x88] sm:$0xff] }
 0x1cf   : > { %1848 = vst [vmem:[%s3738_s25 + $0xd0] sm:$0xff] %v1847_v51  ;;  %1850 = vst [vmem:[%s3738_s25 + $0xe0] sm:$0xff] %v1849_v43  ;;  %v1857_v15 = vld [vmem:[%s2601_s17 + $0x90] sm:$0xff]  ;;  %v1859_v62 = vld [vmem:[%s2601_s17 + $0x98] sm:$0xff] }
 0x1d0   : > { %1852 = vst [vmem:[%s3738_s25 + $0xf0] sm:$0xff] %v1851_v42  ;;  %1854 = vst [vmem:[%s3738_s25 + $0x100] sm:$0xff] %v1853_v2  ;;  %v1861_v55 = vld [vmem:[%s2601_s17 + $0xa0] sm:$0xff]  ;;  %v1863_v31 = vld [vmem:[%s2601_s17 + $0xa8] sm:$0xff] }
 0x1d1   : > { %1856 = vst [vmem:[%s3738_s25 + $0x110] sm:$0xff] %v1855_v39  ;;  %1858 = vst [vmem:[%s3738_s25 + $0x120] sm:$0xff] %v1857_v15  ;;  %v1865_v7 = vld [vmem:[%s2601_s17 + $0xb0] sm:$0xff]  ;;  %v1867_v61 = vld [vmem:[%s2601_s17 + $0xb8] sm:$0xff] }
 0x1d2   : > { %1860 = vst [vmem:[%s3738_s25 + $0x130] sm:$0xff] %v1859_v62  ;;  %1862 = vst [vmem:[%s3738_s25 + $0x140] sm:$0xff] %v1861_v55  ;;  %v1869_v27 = vld [vmem:[%s2601_s17 + $0xc0] sm:$0xff]  ;;  %v1871_v12 = vld [vmem:[%s2601_s17 + $0xc8] sm:$0xff] }
 0x1d3   : > { %1864 = vst [vmem:[%s3738_s25 + $0x150] sm:$0xff] %v1863_v31  ;;  %1866 = vst [vmem:[%s3738_s25 + $0x160] sm:$0xff] %v1865_v7  ;;  %v1873_v41 = vld [vmem:[%s2601_s17 + $0xd0] sm:$0xff]  ;;  %v1875_v22 = vld [vmem:[%s2601_s17 + $0xd8] sm:$0xff] }
 0x1d4   : > { %1868 = vst [vmem:[%s3738_s25 + $0x170] sm:$0xff] %v1867_v61  ;;  %1870 = vst [vmem:[%s3738_s25 + $0x180] sm:$0xff] %v1869_v27  ;;  %v1877_v56 = vld [vmem:[%s2601_s17 + $0xe0] sm:$0xff]  ;;  %v1879_v33 = vld [vmem:[%s2601_s17 + $0xe8] sm:$0xff] }
 0x1d5   : > { %1872 = vst [vmem:[%s3738_s25 + $0x190] sm:$0xff] %v1871_v12  ;;  %1874 = vst [vmem:[%s3738_s25 + $0x1a0] sm:$0xff] %v1873_v41  ;;  %v1881_v1 = vld [vmem:[%s2601_s17 + $0xf0] sm:$0xff]  ;;  %v1883_v9 = vld [vmem:[%s2601_s17 + $0xf8] sm:$0xff] }
 0x1d6   : > { %1876 = vst [vmem:[%s3738_s25 + $0x1b0] sm:$0xff] %v1875_v22  ;;  %1878 = vst [vmem:[%s3738_s25 + $0x1c0] sm:$0xff] %v1877_v56  ;;  %v1885_v28 = vld [vmem:[%s2601_s17 + $0x100] sm:$0xff]  ;;  %v1887_v47 = vld [vmem:[%s2601_s17 + $0x108] sm:$0xff] }
 0x1d7   : > { %1880 = vst [vmem:[%s3738_s25 + $0x1d0] sm:$0xff] %v1879_v33  ;;  %1882 = vst [vmem:[%s3738_s25 + $0x1e0] sm:$0xff] %v1881_v1  ;;  %v1889_v11 = vld [vmem:[%s2601_s17 + $0x110] sm:$0xff]  ;;  %v1891_v5 = vld [vmem:[%s2601_s17 + $0x118] sm:$0xff] }
 0x1d8   : > { %1884 = vst [vmem:[%s3738_s25 + $0x1f0] sm:$0xff] %v1883_v9  ;;  %1886 = vst [vmem:[%s3738_s25 + $0x200] sm:$0xff] %v1885_v28  ;;  %v1893_v50 = vld [vmem:[%s2601_s17 + $0x120] sm:$0xff]  ;;  %v1895_v54 = vld [vmem:[%s2601_s17 + $0x128] sm:$0xff] }
 0x1d9   : > { %1888 = vst [vmem:[%s3738_s25 + $0x210] sm:$0xff] %v1887_v47  ;;  %1890 = vst [vmem:[%s3738_s25 + $0x220] sm:$0xff] %v1889_v11  ;;  %v1897_v6 = vld [vmem:[%s2601_s17 + $0x130] sm:$0xff]  ;;  %v1899_v0 = vld [vmem:[%s2601_s17 + $0x138] sm:$0xff] }
 0x1da   : > { %1892 = vst [vmem:[%s3738_s25 + $0x230] sm:$0xff] %v1891_v5  ;;  %1894 = vst [vmem:[%s3738_s25 + $0x240] sm:$0xff] %v1893_v50  ;;  %v1901_v60 = vld [vmem:[%s2601_s17 + $0x140] sm:$0xff]  ;;  %v1903_v36 = vld [vmem:[%s2601_s17 + $0x148] sm:$0xff] }
 0x1db   : > { %1896 = vst [vmem:[%s3738_s25 + $0x250] sm:$0xff] %v1895_v54  ;;  %1898 = vst [vmem:[%s3738_s25 + $0x260] sm:$0xff] %v1897_v6  ;;  %v1905_v44 = vld [vmem:[%s2601_s17 + $0x150] sm:$0xff]  ;;  %v1907_v29 = vld [vmem:[%s2601_s17 + $0x158] sm:$0xff] }
 0x1dc   : > { %1900 = vst [vmem:[%s3738_s25 + $0x270] sm:$0xff] %v1899_v0  ;;  %1902 = vst [vmem:[%s3738_s25 + $0x280] sm:$0xff] %v1901_v60  ;;  %v1909_v45 = vld [vmem:[%s2601_s17 + $0x160] sm:$0xff]  ;;  %v1911_v40 = vld [vmem:[%s2601_s17 + $0x168] sm:$0xff] }
 0x1dd   : > { %1904 = vst [vmem:[%s3738_s25 + $0x290] sm:$0xff] %v1903_v36  ;;  %1906 = vst [vmem:[%s3738_s25 + $0x2a0] sm:$0xff] %v1905_v44  ;;  %v1913_v13 = vld [vmem:[%s2601_s17 + $0x170] sm:$0xff]  ;;  %v1915_v35 = vld [vmem:[%s2601_s17 + $0x178] sm:$0xff] }
 0x1de   : > { %1908 = vst [vmem:[%s3738_s25 + $0x2b0] sm:$0xff] %v1907_v29  ;;  %1910 = vst [vmem:[%s3738_s25 + $0x2c0] sm:$0xff] %v1909_v45  ;;  %v1917_v23 = vld [vmem:[%s2601_s17 + $0x180] sm:$0xff]  ;;  %v1919_v34 = vld [vmem:[%s2601_s17 + $0x188] sm:$0xff] }
 0x1df   : > { %1912 = vst [vmem:[%s3738_s25 + $0x2d0] sm:$0xff] %v1911_v40  ;;  %1914 = vst [vmem:[%s3738_s25 + $0x2e0] sm:$0xff] %v1913_v13  ;;  %v1921_v49 = vld [vmem:[%s2601_s17 + $0x190] sm:$0xff]  ;;  %v1923_v46 = vld [vmem:[%s2601_s17 + $0x198] sm:$0xff] }
 0x1e0   : > { %1916 = vst [vmem:[%s3738_s25 + $0x2f0] sm:$0xff] %v1915_v35  ;;  %1918 = vst [vmem:[%s3738_s25 + $0x300] sm:$0xff] %v1917_v23  ;;  %v1925_v4 = vld [vmem:[%s2601_s17 + $0x1a0] sm:$0xff]  ;;  %v1927_v24 = vld [vmem:[%s2601_s17 + $0x1a8] sm:$0xff] }
 0x1e1   : > { %1920 = vst [vmem:[%s3738_s25 + $0x310] sm:$0xff] %v1919_v34  ;;  %1922 = vst [vmem:[%s3738_s25 + $0x320] sm:$0xff] %v1921_v49  ;;  %v1929_v58 = vld [vmem:[%s2601_s17 + $0x1b0] sm:$0xff]  ;;  %v1931_v38 = vld [vmem:[%s2601_s17 + $0x1b8] sm:$0xff] }
 0x1e2   : > { %1924 = vst [vmem:[%s3738_s25 + $0x330] sm:$0xff] %v1923_v46  ;;  %1926 = vst [vmem:[%s3738_s25 + $0x340] sm:$0xff] %v1925_v4  ;;  %v1933_v3 = vld [vmem:[%s2601_s17 + $0x1c0] sm:$0xff]  ;;  %v1935_v37 = vld [vmem:[%s2601_s17 + $0x1c8] sm:$0xff] }
 0x1e3   : > { %1928 = vst [vmem:[%s3738_s25 + $0x350] sm:$0xff] %v1927_v24  ;;  %1930 = vst [vmem:[%s3738_s25 + $0x360] sm:$0xff] %v1929_v58  ;;  %v1937_v17 = vld [vmem:[%s2601_s17 + $0x1d0] sm:$0xff]  ;;  %v1939_v19 = vld [vmem:[%s2601_s17 + $0x1d8] sm:$0xff] }
 0x1e4   : > { %1932 = vst [vmem:[%s3738_s25 + $0x370] sm:$0xff] %v1931_v38  ;;  %1934 = vst [vmem:[%s3738_s25 + $0x380] sm:$0xff] %v1933_v3  ;;  %v1941_v14 = vld [vmem:[%s2601_s17 + $0x1e0] sm:$0xff]  ;;  %v1943_v57 = vld [vmem:[%s2601_s17 + $0x1e8] sm:$0xff] }
 0x1e5   : > { %1936 = vst [vmem:[%s3738_s25 + $0x390] sm:$0xff] %v1935_v37  ;;  %1938 = vst [vmem:[%s3738_s25 + $0x3a0] sm:$0xff] %v1937_v17  ;;  %v1945_v16 = vld [vmem:[%s2601_s17 + $0x1f0] sm:$0xff]  ;;  %v1947_v21 = vld [vmem:[%s2601_s17 + $0x1f8] sm:$0xff] }
 0x1e6   : > { %1940 = vst [vmem:[%s3738_s25 + $0x3b0] sm:$0xff] %v1939_v19  ;;  %1942 = vst [vmem:[%s3738_s25 + $0x3c0] sm:$0xff] %v1941_v14 }
 0x1e7   : > { %1944 = vst [vmem:[%s3738_s25 + $0x3d0] sm:$0xff] %v1943_v57  ;;  %1946 = vst [vmem:[%s3738_s25 + $0x3e0] sm:$0xff] %v1945_v16 }
 0x1e8   : > { %1948 = vst [vmem:[%s3738_s25 + $0x3f0] sm:$0xff] %v1947_v21 }
 0x1e9 PF: > { %s16_s21 = sadd.s32 1, %s2445_s21   ;;  %s3978_s17 = smov %s2433_s18 }
 0x1ea   : > { %p13_p9 = scmp.ge.s32.totalorder %s16_s21, 4   ;;  %s3979_s18 = smov %s2559_s27 }
 0x1eb   : > { %s3980_s19 = smov %s2441_s20  ;;  %s3981_s20 = smov %s3983_s22 }
 0x1ec   :  { %15 = sbr.rel (!%p13_p9) target bundleno = 5 (0x5), region = 160 }
 0x1f3   :  { %1964 = vsyncpa [#allocation5], 1 }
 0x1f4   :  { %1966 = vsyncpa [#allocation5 + $0x1], 1 }

</bundles_post_ra>
